<compile_context>
chip_gen: v7x
topology: tpu7x:2x2x1
jax: 0.10.0
libtpu: 0.0.40
codegen_flags: <defaults>
</compile_context>

<pallas_src>
import math
import jax
import jax.numpy as jnp
from jax.experimental import pallas as pl

# ---------------- config (small, consistent with the module's __init__) -------------
HIDDEN = 32          # params['encoder_hidden']
NUM_HEADS = 8        # params.get('num_heads', 8)
HEAD_DIM = HIDDEN // NUM_HEADS
FFN_DIM = 64         # params.get('ffn_dim', 2048) -> small for the demo
NUM_LAYERS = 2       # params.get('num_layers', 6) -> small for the demo
NUM_EDGES = 4        # params['num_edge_types']
LN_EPS = 1e-5
NEG_INF = -1e9


def _layer_norm(x, w, b):
    mean = jnp.mean(x, axis=-1, keepdims=True)
    var = jnp.mean(jnp.square(x - mean), axis=-1, keepdims=True)
    return (x - mean) * jax.lax.rsqrt(var + LN_EPS) * w + b


# ---------------- fused Pallas kernel: full encoder, whole batch, one invocation -----
def encoder_kernel(x_ref, wqkv_ref, bqkv_ref, wo_ref, w1_ref, w2_ref,
                   vech_ref, b1_ref, wout_ref, bout_ref,
                   tk_ref, tv_ref, kmask_ref, vmask_ref, abias_ref,
                   out_ref):
    H = HIDDEN

    x = x_ref[...]                 # (N, H): batch folded into the sublane axis, N = B*S
    tk = tk_ref[...]               # (N, NH*N)   horizontal stack of I_N
    tv = tv_ref[...]               # (NH*N, N)   vertical stack of I_N
    kmask = kmask_ref[...]         # (H, NH*N)   head-block-diagonal 0/1 mask
    vmask = vmask_ref[...]         # (NH*N, H)   head-block-diagonal 0/1 mask
    abias = abias_ref[...]         # (N, NH*N)   0 within batch element, -1e9 across

    # TODO(synk): replace this static unroll with a layer grid axis / fori_loop + per-layer
    # weight streaming (and bf16 weights) before scaling to production num_layers/ffn_dim.
    for l in range(NUM_LAYERS):    # static unroll; all weights resident in VMEM (~100 KB)
        wqkv, bqkv = wqkv_ref[l], bqkv_ref[l]     # (H, 3H), (1, 3H); 1/sqrt(hd) pre-folded
        wo, w1, w2 = wo_ref[l], w1_ref[l], w2_ref[l]
        vech, b1 = vech_ref[l], b1_ref[l]         # (8, H) packed rows, (1, F)
        bo, ln1_w, ln1_b = vech[0:1], vech[1:2], vech[2:3]
        b2, ln2_w, ln2_b = vech[3:4], vech[4:5], vech[5:6]

        # ---- fused QKV projection + single (1, 3H) bias add ----
        qkv = jnp.dot(x, wqkv, preferred_element_type=jnp.float32) + bqkv   # (N, 3H)
        q = qkv[:, 0:H]
        k = qkv[:, H:2 * H]
        v = qkv[:, 2 * H:3 * H]

        # ---- all-heads attention: block-diagonal K^T / V built with constant matmuls ----
        kT = jnp.transpose(k)                                               # (H, N): one transpose/layer
        g = jnp.dot(kT, tk, preferred_element_type=jnp.float32) * kmask     # (H, NH*N) = blkdiag(K_h^T)
        s = jnp.dot(q, g, preferred_element_type=jnp.float32) + abias       # (N, NH*N) all-head scores
        m = jnp.max(s, axis=-1, keepdims=True)      # row-global max: a valid shift for every head block
        p = jnp.exp(s - m)                          # masked (cross-batch) columns underflow to exactly 0
        v_bd = jnp.dot(tv, v, preferred_element_type=jnp.float32) * vmask   # (NH*N, H) = blkdiag(V_h)
        num = jnp.dot(p, v_bd, preferred_element_type=jnp.float32)          # (N, H): heads already concatenated
        den = jnp.dot(p, vmask, preferred_element_type=jnp.float32)         # (N, H): per-head softmax sums
        attn = num / den                            # exact divide for PyTorch parity (den >= exp(-Δ)*S > 0)
        attn = jnp.dot(attn, wo, preferred_element_type=jnp.float32) + bo

        # ---- post-norm residual blocks (TransformerEncoderLayer, norm_first=False) ----
        x = _layer_norm(x + attn, ln1_w, ln1_b)
        h1 = jnp.maximum(jnp.dot(x, w1, preferred_element_type=jnp.float32) + b1, 0.0)
        ff = jnp.dot(h1, w2, preferred_element_type=jnp.float32) + b2
        x = _layer_norm(x + ff, ln2_w, ln2_b)

    # ---- fused encoder_fc_out + prior_fc_out: one (N, H) @ (H, 2E) matmul ----
    # TODO(synk): pad 2E up to a 128-lane slab for lane-dense stores once B*S grows.
    out_ref[...] = jnp.dot(x, wout_ref[...],
                           preferred_element_type=jnp.float32) + bout_ref[...]


# ---------------- host-side parameter packing ----------------------------------------
def pack_params(layers, we, be, wp, bp):
    """Pre-transpose matrices to (in,out), fold the attention scale, pack small vectors."""
    H, F = HIDDEN, FFN_DIM
    scale = 1.0 / math.sqrt(HEAD_DIM)
    # fold 1/sqrt(head_dim) into the Q columns AND the Q bias segment
    qscale = jnp.concatenate([jnp.full((H,), scale, jnp.float32),
                              jnp.ones((2 * H,), jnp.float32)])             # (3H,)

    wqkv_all = jnp.stack([lp['in_proj_weight'].T * qscale[None, :] for lp in layers])   # (L,H,3H)
    bqkv_all = jnp.stack([(lp['in_proj_bias'] * qscale)[None, :] for lp in layers])     # (L,1,3H)
    wo_all = jnp.stack([lp['out_proj_weight'].T for lp in layers])                      # (L,H,H)
    w1_all = jnp.stack([lp['linear1_weight'].T for lp in layers])                       # (L,H,F)
    w2_all = jnp.stack([lp['linear2_weight'].T for lp in layers])                       # (L,F,H)

    zeros_h = jnp.zeros((H,), jnp.float32)
    vech_all = jnp.stack([
        jnp.stack([lp['out_proj_bias'], lp['norm1_weight'], lp['norm1_bias'],
                   lp['linear2_bias'], lp['norm2_weight'], lp['norm2_bias'],
                   zeros_h, zeros_h])                                       # (8, H)
        for lp in layers])                                                  # (L, 8, H)
    b1_all = jnp.stack([lp['linear1_bias'][None, :] for lp in layers])      # (L, 1, F)

    wout = jnp.concatenate([we.T, wp.T], axis=1)                            # (H, 2E) [enc | prior]
    bout = jnp.concatenate([be, bp], axis=0)[None, :]                       # (1, 2E)
    return wqkv_all, bqkv_all, wo_all, w1_all, w2_all, vech_all, b1_all, wout, bout


def make_attention_constants(B, S):
    """Constant 0/1 tiling matrices, head-block masks, and batch-block attention bias."""
    N = B * S
    NHN = NUM_HEADS * N
    H, hd = HIDDEN, HEAD_DIM
    eye = jnp.eye(N, dtype=jnp.float32)
    tk = jnp.tile(eye, (1, NUM_HEADS))                                      # (N, NHN)
    tv = jnp.tile(eye, (NUM_HEADS, 1))                                      # (NHN, N)
    head_of_dim = jnp.arange(H) // hd                                       # (H,)
    head_of_col = jnp.arange(NHN) // N                                      # (NHN,)
    kmask = (head_of_dim[:, None] == head_of_col[None, :]).astype(jnp.float32)   # (H, NHN)
    vmask = (head_of_col[:, None] == head_of_dim[None, :]).astype(jnp.float32)   # (NHN, H)
    batch_q = jnp.arange(N) // S
    batch_k = (jnp.arange(NHN) % N) // S
    abias = jnp.where(batch_q[:, None] == batch_k[None, :], 0.0, NEG_INF
                      ).astype(jnp.float32)                                 # (N, NHN)
    return tk, tv, kmask, vmask, abias


# ---------------- wrapper -------------------------------------------------------------
def dnri_dynamicvars_encoder(x, layers, we, be, wp, bp):
    """x: (B, S, H) already-normalized inputs (normalized_inputs concatenated)."""
    B, S, H = x.shape
    E = we.shape[0]
    N = B * S
    x2d = x.reshape(N, H)                       # fold batch into the sublane axis

    packed = pack_params(layers, we, be, wp, bp)
    consts = make_attention_constants(B, S)

    # Single invocation, no grid: every operand is a whole-array VMEM-resident block.
    out2d = pl.pallas_call(
        encoder_kernel,
        out_shape=jax.ShapeDtypeStruct((N, 2 * E), jnp.float32),
    )(x2d, *packed, *consts)

    out = out2d.reshape(B, S, 2 * E)
    encoder_result = out[..., :E]
    prior_result = out[..., E:]
    return prior_result, encoder_result, None


# ---------------- pure-JAX reference (for correctness check) -------------------------
def _ref_forward(x, layers, we, be, wp, bp):
    H, hd = HIDDEN, HEAD_DIM
    scale = 1.0 / math.sqrt(hd)
    B, S, _ = x.shape
    for lp in layers:
        w = lp['in_proj_weight']; b = lp['in_proj_bias']
        q = x @ w[0:H].T + b[0:H]
        k = x @ w[H:2 * H].T + b[H:2 * H]
        v = x @ w[2 * H:3 * H].T + b[2 * H:3 * H]
        qh = q.reshape(B, S, NUM_HEADS, hd).transpose(0, 2, 1, 3)
        kh = k.reshape(B, S, NUM_HEADS, hd).transpose(0, 2, 1, 3)
        vh = v.reshape(B, S, NUM_HEADS, hd).transpose(0, 2, 1, 3)
        s = jnp.einsum('bhqd,bhkd->bhqk', qh, kh) * scale
        p = jax.nn.softmax(s, axis=-1)
        o = jnp.einsum('bhqk,bhkd->bhqd', p, vh).transpose(0, 2, 1, 3).reshape(B, S, H)
        attn_out = o @ lp['out_proj_weight'].T + lp['out_proj_bias']
        x = _layer_norm(x + attn_out, lp['norm1_weight'], lp['norm1_bias'])
        h1 = jax.nn.relu(x @ lp['linear1_weight'].T + lp['linear1_bias'])
        ff = h1 @ lp['linear2_weight'].T + lp['linear2_bias']
        x = _layer_norm(x + ff, lp['norm2_weight'], lp['norm2_bias'])
    return x @ wp.T + bp, x @ we.T + be   # (prior, encoder)


# ---------------- deterministic parameter init (PyTorch layouts) ----------------------
def make_layer_params(key):
    ks = jax.random.split(key, 8)
    H, F = HIDDEN, FFN_DIM
    s = 0.1
    return dict(
        in_proj_weight=s * jax.random.normal(ks[0], (3 * H, H), jnp.float32),
        in_proj_bias=s * jax.random.normal(ks[1], (3 * H,), jnp.float32),
        out_proj_weight=s * jax.random.normal(ks[2], (H, H), jnp.float32),
        out_proj_bias=s * jax.random.normal(ks[3], (H,), jnp.float32),
        norm1_weight=jnp.ones((H,), jnp.float32),
        norm1_bias=jnp.zeros((H,), jnp.float32),
        linear1_weight=s * jax.random.normal(ks[4], (F, H), jnp.float32),
        linear1_bias=s * jax.random.normal(ks[5], (F,), jnp.float32),
        linear2_weight=s * jax.random.normal(ks[6], (H, F), jnp.float32),
        linear2_bias=s * jax.random.normal(ks[7], (H,), jnp.float32),
        norm2_weight=jnp.ones((H,), jnp.float32),
        norm2_bias=jnp.zeros((H,), jnp.float32),
    )


if __name__ == "__main__":
    key = jax.random.PRNGKey(0)
    kx, kp = jax.random.split(key)

    B, S = 2, 16
    x = jax.random.normal(kx, (B, S, HIDDEN), jnp.float32)

    layer_keys = jax.random.split(kp, NUM_LAYERS + 1)
    layers = [make_layer_params(layer_keys[i]) for i in range(NUM_LAYERS)]

    kout = jax.random.split(layer_keys[-1], 4)
    we = 0.1 * jax.random.normal(kout[0], (NUM_EDGES, HIDDEN), jnp.float32)  # encoder_fc_out.weight
    be = 0.1 * jax.random.normal(kout[1], (NUM_EDGES,), jnp.float32)         # encoder_fc_out.bias
    wp = 0.1 * jax.random.normal(kout[2], (NUM_EDGES, HIDDEN), jnp.float32)  # prior_fc_out.weight
    bp = 0.1 * jax.random.normal(kout[3], (NUM_EDGES,), jnp.float32)         # prior_fc_out.bias

    prior_result, encoder_result, _ = dnri_dynamicvars_encoder(x, layers, we, be, wp, bp)
    jax.block_until_ready((prior_result, encoder_result))

    assert prior_result.shape == (B, S, NUM_EDGES)
    assert encoder_result.shape == (B, S, NUM_EDGES)
    assert bool(jnp.all(jnp.isfinite(prior_result)))
    assert bool(jnp.all(jnp.isfinite(encoder_result)))

    # correctness vs pure-JAX reference (exact softmax divide -> tight tolerance)
    prior_ref, enc_ref = _ref_forward(x, layers, we, be, wp, bp)
    assert bool(jnp.allclose(prior_result, prior_ref, atol=1e-3, rtol=1e-3))
    assert bool(jnp.allclose(encoder_result, enc_ref, atol=1e-3, rtol=1e-3))

    print("KERNEL_OK")
</pallas_src>

<mosaic_0001>
module attributes {stable_mosaic.version = 11 : i64} {
  func.func @encoder_kernel(%arg0: memref<32x32xf32, #tpu.memory_space<vmem>>, %arg1: memref<2x32x96xf32, #tpu.memory_space<vmem>>, %arg2: memref<2x1x96xf32, #tpu.memory_space<vmem>>, %arg3: memref<2x32x32xf32, #tpu.memory_space<vmem>>, %arg4: memref<2x32x64xf32, #tpu.memory_space<vmem>>, %arg5: memref<2x64x32xf32, #tpu.memory_space<vmem>>, %arg6: memref<2x8x32xf32, #tpu.memory_space<vmem>>, %arg7: memref<2x1x64xf32, #tpu.memory_space<vmem>>, %arg8: memref<32x8xf32, #tpu.memory_space<vmem>>, %arg9: memref<1x8xf32, #tpu.memory_space<vmem>>, %arg10: memref<32x256xf32, #tpu.memory_space<vmem>>, %arg11: memref<256x32xf32, #tpu.memory_space<vmem>>, %arg12: memref<32x256xf32, #tpu.memory_space<vmem>>, %arg13: memref<256x32xf32, #tpu.memory_space<vmem>>, %arg14: memref<32x256xf32, #tpu.memory_space<vmem>>, %arg15: memref<32x8xf32, #tpu.memory_space<vmem>>) attributes {dimension_semantics = [], scalar_prefetch = 0 : i64, scratch_operands = 0 : i64, tpu.core_type = #tpu.core_type<tc>} {
    %c0 = arith.constant 0 : index
    %c0_0 = arith.constant 0 : index
    %0 = vector.load %arg0[%c0, %c0_0] : memref<32x32xf32, #tpu.memory_space<vmem>>, vector<32x32xf32>
    %c0_1 = arith.constant 0 : index
    %c0_2 = arith.constant 0 : index
    %1 = vector.load %arg10[%c0_1, %c0_2] : memref<32x256xf32, #tpu.memory_space<vmem>>, vector<32x256xf32>
    %c0_3 = arith.constant 0 : index
    %c0_4 = arith.constant 0 : index
    %2 = vector.load %arg11[%c0_3, %c0_4] : memref<256x32xf32, #tpu.memory_space<vmem>>, vector<256x32xf32>
    %c0_5 = arith.constant 0 : index
    %c0_6 = arith.constant 0 : index
    %3 = vector.load %arg12[%c0_5, %c0_6] : memref<32x256xf32, #tpu.memory_space<vmem>>, vector<32x256xf32>
    %c0_7 = arith.constant 0 : index
    %c0_8 = arith.constant 0 : index
    %4 = vector.load %arg13[%c0_7, %c0_8] : memref<256x32xf32, #tpu.memory_space<vmem>>, vector<256x32xf32>
    %c0_9 = arith.constant 0 : index
    %c0_10 = arith.constant 0 : index
    %5 = vector.load %arg14[%c0_9, %c0_10] : memref<32x256xf32, #tpu.memory_space<vmem>>, vector<32x256xf32>
    %c0_11 = arith.constant 0 : index
    %c0_12 = arith.constant 0 : index
    %c0_13 = arith.constant 0 : index
    %6 = vector.load %arg1[%c0_11, %c0_12, %c0_13] : memref<2x32x96xf32, #tpu.memory_space<vmem>>, vector<1x32x96xf32>
    %7 = vector.shape_cast %6 : vector<1x32x96xf32> to vector<32x96xf32>
    %c0_14 = arith.constant 0 : index
    %c0_15 = arith.constant 0 : index
    %c0_16 = arith.constant 0 : index
    %8 = vector.load %arg2[%c0_14, %c0_15, %c0_16] : memref<2x1x96xf32, #tpu.memory_space<vmem>>, vector<1x1x96xf32>
    %9 = vector.shape_cast %8 : vector<1x1x96xf32> to vector<1x96xf32>
    %c0_17 = arith.constant 0 : index
    %c0_18 = arith.constant 0 : index
    %c0_19 = arith.constant 0 : index
    %10 = vector.load %arg3[%c0_17, %c0_18, %c0_19] : memref<2x32x32xf32, #tpu.memory_space<vmem>>, vector<1x32x32xf32>
    %11 = vector.shape_cast %10 : vector<1x32x32xf32> to vector<32x32xf32>
    %c0_20 = arith.constant 0 : index
    %c0_21 = arith.constant 0 : index
    %c0_22 = arith.constant 0 : index
    %12 = vector.load %arg4[%c0_20, %c0_21, %c0_22] : memref<2x32x64xf32, #tpu.memory_space<vmem>>, vector<1x32x64xf32>
    %13 = vector.shape_cast %12 : vector<1x32x64xf32> to vector<32x64xf32>
    %c0_23 = arith.constant 0 : index
    %c0_24 = arith.constant 0 : index
    %c0_25 = arith.constant 0 : index
    %14 = vector.load %arg5[%c0_23, %c0_24, %c0_25] : memref<2x64x32xf32, #tpu.memory_space<vmem>>, vector<1x64x32xf32>
    %15 = vector.shape_cast %14 : vector<1x64x32xf32> to vector<64x32xf32>
    %c0_26 = arith.constant 0 : index
    %c0_27 = arith.constant 0 : index
    %c0_28 = arith.constant 0 : index
    %16 = vector.load %arg6[%c0_26, %c0_27, %c0_28] : memref<2x8x32xf32, #tpu.memory_space<vmem>>, vector<1x8x32xf32>
    %17 = vector.shape_cast %16 : vector<1x8x32xf32> to vector<8x32xf32>
    %c0_29 = arith.constant 0 : index
    %c0_30 = arith.constant 0 : index
    %c0_31 = arith.constant 0 : index
    %18 = vector.load %arg7[%c0_29, %c0_30, %c0_31] : memref<2x1x64xf32, #tpu.memory_space<vmem>>, vector<1x1x64xf32>
    %19 = vector.shape_cast %18 : vector<1x1x64xf32> to vector<1x64xf32>
    %20 = vector.extract_strided_slice %17 {offsets = [0, 0], sizes = [1, 32], strides = [1, 1]} : vector<8x32xf32> to vector<1x32xf32>
    %21 = vector.extract_strided_slice %17 {offsets = [1, 0], sizes = [1, 32], strides = [1, 1]} : vector<8x32xf32> to vector<1x32xf32>
    %22 = vector.extract_strided_slice %17 {offsets = [2, 0], sizes = [1, 32], strides = [1, 1]} : vector<8x32xf32> to vector<1x32xf32>
    %23 = vector.extract_strided_slice %17 {offsets = [3, 0], sizes = [1, 32], strides = [1, 1]} : vector<8x32xf32> to vector<1x32xf32>
    %24 = vector.extract_strided_slice %17 {offsets = [4, 0], sizes = [1, 32], strides = [1, 1]} : vector<8x32xf32> to vector<1x32xf32>
    %25 = vector.extract_strided_slice %17 {offsets = [5, 0], sizes = [1, 32], strides = [1, 1]} : vector<8x32xf32> to vector<1x32xf32>
    %cst = arith.constant dense<0.000000e+00> : vector<32x96xf32>
    %26 = tpu.matmul %0, %7, %cst {dimension_numbers = #tpu.dot_dimension_numbers<[1], [0], [0], [1], [0, 0, 1, 1], [], []>} : vector<32x32xf32>, vector<32x96xf32>, vector<32x96xf32> -> vector<32x96xf32>
    %27 = vector.broadcast %9 : vector<1x96xf32> to vector<32x96xf32>
    %28 = arith.addf %26, %27 : vector<32x96xf32>
    %29 = vector.extract_strided_slice %28 {offsets = [0, 0], sizes = [32, 32], strides = [1, 1]} : vector<32x96xf32> to vector<32x32xf32>
    %30 = vector.extract_strided_slice %28 {offsets = [0, 32], sizes = [32, 32], strides = [1, 1]} : vector<32x96xf32> to vector<32x32xf32>
    %31 = vector.extract_strided_slice %28 {offsets = [0, 64], sizes = [32, 32], strides = [1, 1]} : vector<32x96xf32> to vector<32x32xf32>
    %32 = tpu.transpose %30, [1, 0] : vector<32x32xf32> -> vector<32x32xf32>
    %cst_32 = arith.constant dense<0.000000e+00> : vector<32x256xf32>
    %33 = tpu.matmul %32, %1, %cst_32 {dimension_numbers = #tpu.dot_dimension_numbers<[1], [0], [0], [1], [0, 0, 1, 1], [], []>} : vector<32x32xf32>, vector<32x256xf32>, vector<32x256xf32> -> vector<32x256xf32>
    %34 = arith.mulf %33, %3 : vector<32x256xf32>
    %cst_33 = arith.constant dense<0.000000e+00> : vector<32x256xf32>
    %35 = tpu.matmul %29, %34, %cst_33 {dimension_numbers = #tpu.dot_dimension_numbers<[1], [0], [0], [1], [0, 0, 1, 1], [], []>} : vector<32x32xf32>, vector<32x256xf32>, vector<32x256xf32> -> vector<32x256xf32>
    %36 = arith.addf %35, %5 : vector<32x256xf32>
    %cst_34 = arith.constant dense<0xFF800000> : vector<32xf32>
    %37 = vector.multi_reduction <maximumf>, %36, %cst_34 [1] : vector<32x256xf32> to vector<32xf32>
    %38 = vector.shape_cast %37 : vector<32xf32> to vector<32x1xf32>
    %39 = vector.broadcast %38 : vector<32x1xf32> to vector<32x256xf32>
    %40 = arith.subf %36, %39 : vector<32x256xf32>
    %41 = math.exp %40 : vector<32x256xf32>
    %cst_35 = arith.constant dense<0.000000e+00> : vector<256x32xf32>
    %42 = tpu.matmul %2, %31, %cst_35 {dimension_numbers = #tpu.dot_dimension_numbers<[1], [0], [0], [1], [0, 0, 1, 1], [], []>} : vector<256x32xf32>, vector<32x32xf32>, vector<256x32xf32> -> vector<256x32xf32>
    %43 = arith.mulf %42, %4 : vector<256x32xf32>
    %cst_36 = arith.constant dense<0.000000e+00> : vector<32x32xf32>
    %44 = tpu.matmul %41, %43, %cst_36 {dimension_numbers = #tpu.dot_dimension_numbers<[1], [0], [0], [1], [0, 0, 1, 1], [], []>} : vector<32x256xf32>, vector<256x32xf32>, vector<32x32xf32> -> vector<32x32xf32>
    %cst_37 = arith.constant dense<0.000000e+00> : vector<32x32xf32>
    %45 = tpu.matmul %41, %4, %cst_37 {dimension_numbers = #tpu.dot_dimension_numbers<[1], [0], [0], [1], [0, 0, 1, 1], [], []>} : vector<32x256xf32>, vector<256x32xf32>, vector<32x32xf32> -> vector<32x32xf32>
    %46 = arith.divf %44, %45 : vector<32x32xf32>
    %cst_38 = arith.constant dense<0.000000e+00> : vector<32x32xf32>
    %47 = tpu.matmul %46, %11, %cst_38 {dimension_numbers = #tpu.dot_dimension_numbers<[1], [0], [0], [1], [0, 0, 1, 1], [], []>} : vector<32x32xf32>, vector<32x32xf32>, vector<32x32xf32> -> vector<32x32xf32>
    %48 = vector.broadcast %20 : vector<1x32xf32> to vector<32x32xf32>
    %49 = arith.addf %47, %48 : vector<32x32xf32>
    %50 = arith.addf %0, %49 : vector<32x32xf32>
    %cst_39 = arith.constant dense<0.000000e+00> : vector<32xf32>
    %51 = vector.multi_reduction <add>, %50, %cst_39 [1] : vector<32x32xf32> to vector<32xf32>
    %52 = vector.shape_cast %51 : vector<32xf32> to vector<32x1xf32>
    %cst_40 = arith.constant 3.200000e+01 : f32
    %53 = vector.broadcast %cst_40 : f32 to vector<32x1xf32>
    %54 = arith.divf %52, %53 : vector<32x1xf32>
    %55 = vector.broadcast %54 : vector<32x1xf32> to vector<32x32xf32>
    %56 = arith.subf %50, %55 : vector<32x32xf32>
    %57 = arith.mulf %56, %56 : vector<32x32xf32>
    %cst_41 = arith.constant dense<0.000000e+00> : vector<32xf32>
    %58 = vector.multi_reduction <add>, %57, %cst_41 [1] : vector<32x32xf32> to vector<32xf32>
    %59 = vector.shape_cast %58 : vector<32xf32> to vector<32x1xf32>
    %cst_42 = arith.constant 3.200000e+01 : f32
    %60 = vector.broadcast %cst_42 : f32 to vector<32x1xf32>
    %61 = arith.divf %59, %60 : vector<32x1xf32>
    %62 = vector.broadcast %54 : vector<32x1xf32> to vector<32x32xf32>
    %63 = arith.subf %50, %62 : vector<32x32xf32>
    %cst_43 = arith.constant 9.99999974E-6 : f32
    %64 = vector.broadcast %cst_43 : f32 to vector<32x1xf32>
    %65 = arith.addf %61, %64 : vector<32x1xf32>
    %66 = math.rsqrt %65 : vector<32x1xf32>
    %67 = vector.broadcast %66 : vector<32x1xf32> to vector<32x32xf32>
    %68 = arith.mulf %63, %67 : vector<32x32xf32>
    %69 = vector.broadcast %21 : vector<1x32xf32> to vector<32x32xf32>
    %70 = arith.mulf %68, %69 : vector<32x32xf32>
    %71 = vector.broadcast %22 : vector<1x32xf32> to vector<32x32xf32>
    %72 = arith.addf %70, %71 : vector<32x32xf32>
    %cst_44 = arith.constant dense<0.000000e+00> : vector<32x64xf32>
    %73 = tpu.matmul %72, %13, %cst_44 {dimension_numbers = #tpu.dot_dimension_numbers<[1], [0], [0], [1], [0, 0, 1, 1], [], []>} : vector<32x32xf32>, vector<32x64xf32>, vector<32x64xf32> -> vector<32x64xf32>
    %74 = vector.broadcast %19 : vector<1x64xf32> to vector<32x64xf32>
    %75 = arith.addf %73, %74 : vector<32x64xf32>
    %cst_45 = arith.constant 0.000000e+00 : f32
    %76 = vector.broadcast %cst_45 : f32 to vector<32x64xf32>
    %77 = arith.maximumf %75, %76 : vector<32x64xf32>
    %cst_46 = arith.constant dense<0.000000e+00> : vector<32x32xf32>
    %78 = tpu.matmul %77, %15, %cst_46 {dimension_numbers = #tpu.dot_dimension_numbers<[1], [0], [0], [1], [0, 0, 1, 1], [], []>} : vector<32x64xf32>, vector<64x32xf32>, vector<32x32xf32> -> vector<32x32xf32>
    %79 = vector.broadcast %23 : vector<1x32xf32> to vector<32x32xf32>
    %80 = arith.addf %78, %79 : vector<32x32xf32>
    %81 = arith.addf %72, %80 : vector<32x32xf32>
    %cst_47 = arith.constant dense<0.000000e+00> : vector<32xf32>
    %82 = vector.multi_reduction <add>, %81, %cst_47 [1] : vector<32x32xf32> to vector<32xf32>
    %83 = vector.shape_cast %82 : vector<32xf32> to vector<32x1xf32>
    %cst_48 = arith.constant 3.200000e+01 : f32
    %84 = vector.broadcast %cst_48 : f32 to vector<32x1xf32>
    %85 = arith.divf %83, %84 : vector<32x1xf32>
    %86 = vector.broadcast %85 : vector<32x1xf32> to vector<32x32xf32>
    %87 = arith.subf %81, %86 : vector<32x32xf32>
    %88 = arith.mulf %87, %87 : vector<32x32xf32>
    %cst_49 = arith.constant dense<0.000000e+00> : vector<32xf32>
    %89 = vector.multi_reduction <add>, %88, %cst_49 [1] : vector<32x32xf32> to vector<32xf32>
    %90 = vector.shape_cast %89 : vector<32xf32> to vector<32x1xf32>
    %cst_50 = arith.constant 3.200000e+01 : f32
    %91 = vector.broadcast %cst_50 : f32 to vector<32x1xf32>
    %92 = arith.divf %90, %91 : vector<32x1xf32>
    %93 = vector.broadcast %85 : vector<32x1xf32> to vector<32x32xf32>
    %94 = arith.subf %81, %93 : vector<32x32xf32>
    %cst_51 = arith.constant 9.99999974E-6 : f32
    %95 = vector.broadcast %cst_51 : f32 to vector<32x1xf32>
    %96 = arith.addf %92, %95 : vector<32x1xf32>
    %97 = math.rsqrt %96 : vector<32x1xf32>
    %98 = vector.broadcast %97 : vector<32x1xf32> to vector<32x32xf32>
    %99 = arith.mulf %94, %98 : vector<32x32xf32>
    %100 = vector.broadcast %24 : vector<1x32xf32> to vector<32x32xf32>
    %101 = arith.mulf %99, %100 : vector<32x32xf32>
    %102 = vector.broadcast %25 : vector<1x32xf32> to vector<32x32xf32>
    %103 = arith.addf %101, %102 : vector<32x32xf32>
    %c1 = arith.constant 1 : index
    %c0_52 = arith.constant 0 : index
    %c0_53 = arith.constant 0 : index
    %104 = vector.load %arg1[%c1, %c0_52, %c0_53] : memref<2x32x96xf32, #tpu.memory_space<vmem>>, vector<1x32x96xf32>
    %105 = vector.shape_cast %104 : vector<1x32x96xf32> to vector<32x96xf32>
    %c1_54 = arith.constant 1 : index
    %c0_55 = arith.constant 0 : index
    %c0_56 = arith.constant 0 : index
    %106 = vector.load %arg2[%c1_54, %c0_55, %c0_56] : memref<2x1x96xf32, #tpu.memory_space<vmem>>, vector<1x1x96xf32>
    %107 = vector.shape_cast %106 : vector<1x1x96xf32> to vector<1x96xf32>
    %c1_57 = arith.constant 1 : index
    %c0_58 = arith.constant 0 : index
    %c0_59 = arith.constant 0 : index
    %108 = vector.load %arg3[%c1_57, %c0_58, %c0_59] : memref<2x32x32xf32, #tpu.memory_space<vmem>>, vector<1x32x32xf32>
    %109 = vector.shape_cast %108 : vector<1x32x32xf32> to vector<32x32xf32>
    %c1_60 = arith.constant 1 : index
    %c0_61 = arith.constant 0 : index
    %c0_62 = arith.constant 0 : index
    %110 = vector.load %arg4[%c1_60, %c0_61, %c0_62] : memref<2x32x64xf32, #tpu.memory_space<vmem>>, vector<1x32x64xf32>
    %111 = vector.shape_cast %110 : vector<1x32x64xf32> to vector<32x64xf32>
    %c1_63 = arith.constant 1 : index
    %c0_64 = arith.constant 0 : index
    %c0_65 = arith.constant 0 : index
    %112 = vector.load %arg5[%c1_63, %c0_64, %c0_65] : memref<2x64x32xf32, #tpu.memory_space<vmem>>, vector<1x64x32xf32>
    %113 = vector.shape_cast %112 : vector<1x64x32xf32> to vector<64x32xf32>
    %c1_66 = arith.constant 1 : index
    %c0_67 = arith.constant 0 : index
    %c0_68 = arith.constant 0 : index
    %114 = vector.load %arg6[%c1_66, %c0_67, %c0_68] : memref<2x8x32xf32, #tpu.memory_space<vmem>>, vector<1x8x32xf32>
    %115 = vector.shape_cast %114 : vector<1x8x32xf32> to vector<8x32xf32>
    %c1_69 = arith.constant 1 : index
    %c0_70 = arith.constant 0 : index
    %c0_71 = arith.constant 0 : index
    %116 = vector.load %arg7[%c1_69, %c0_70, %c0_71] : memref<2x1x64xf32, #tpu.memory_space<vmem>>, vector<1x1x64xf32>
    %117 = vector.shape_cast %116 : vector<1x1x64xf32> to vector<1x64xf32>
    %118 = vector.extract_strided_slice %115 {offsets = [0, 0], sizes = [1, 32], strides = [1, 1]} : vector<8x32xf32> to vector<1x32xf32>
    %119 = vector.extract_strided_slice %115 {offsets = [1, 0], sizes = [1, 32], strides = [1, 1]} : vector<8x32xf32> to vector<1x32xf32>
    %120 = vector.extract_strided_slice %115 {offsets = [2, 0], sizes = [1, 32], strides = [1, 1]} : vector<8x32xf32> to vector<1x32xf32>
    %121 = vector.extract_strided_slice %115 {offsets = [3, 0], sizes = [1, 32], strides = [1, 1]} : vector<8x32xf32> to vector<1x32xf32>
    %122 = vector.extract_strided_slice %115 {offsets = [4, 0], sizes = [1, 32], strides = [1, 1]} : vector<8x32xf32> to vector<1x32xf32>
    %123 = vector.extract_strided_slice %115 {offsets = [5, 0], sizes = [1, 32], strides = [1, 1]} : vector<8x32xf32> to vector<1x32xf32>
    %cst_72 = arith.constant dense<0.000000e+00> : vector<32x96xf32>
    %124 = tpu.matmul %103, %105, %cst_72 {dimension_numbers = #tpu.dot_dimension_numbers<[1], [0], [0], [1], [0, 0, 1, 1], [], []>} : vector<32x32xf32>, vector<32x96xf32>, vector<32x96xf32> -> vector<32x96xf32>
    %125 = vector.broadcast %107 : vector<1x96xf32> to vector<32x96xf32>
    %126 = arith.addf %124, %125 : vector<32x96xf32>
    %127 = vector.extract_strided_slice %126 {offsets = [0, 0], sizes = [32, 32], strides = [1, 1]} : vector<32x96xf32> to vector<32x32xf32>
    %128 = vector.extract_strided_slice %126 {offsets = [0, 32], sizes = [32, 32], strides = [1, 1]} : vector<32x96xf32> to vector<32x32xf32>
    %129 = vector.extract_strided_slice %126 {offsets = [0, 64], sizes = [32, 32], strides = [1, 1]} : vector<32x96xf32> to vector<32x32xf32>
    %130 = tpu.transpose %128, [1, 0] : vector<32x32xf32> -> vector<32x32xf32>
    %cst_73 = arith.constant dense<0.000000e+00> : vector<32x256xf32>
    %131 = tpu.matmul %130, %1, %cst_73 {dimension_numbers = #tpu.dot_dimension_numbers<[1], [0], [0], [1], [0, 0, 1, 1], [], []>} : vector<32x32xf32>, vector<32x256xf32>, vector<32x256xf32> -> vector<32x256xf32>
    %132 = arith.mulf %131, %3 : vector<32x256xf32>
    %cst_74 = arith.constant dense<0.000000e+00> : vector<32x256xf32>
    %133 = tpu.matmul %127, %132, %cst_74 {dimension_numbers = #tpu.dot_dimension_numbers<[1], [0], [0], [1], [0, 0, 1, 1], [], []>} : vector<32x32xf32>, vector<32x256xf32>, vector<32x256xf32> -> vector<32x256xf32>
    %134 = arith.addf %133, %5 : vector<32x256xf32>
    %cst_75 = arith.constant dense<0xFF800000> : vector<32xf32>
    %135 = vector.multi_reduction <maximumf>, %134, %cst_75 [1] : vector<32x256xf32> to vector<32xf32>
    %136 = vector.shape_cast %135 : vector<32xf32> to vector<32x1xf32>
    %137 = vector.broadcast %136 : vector<32x1xf32> to vector<32x256xf32>
    %138 = arith.subf %134, %137 : vector<32x256xf32>
    %139 = math.exp %138 : vector<32x256xf32>
    %cst_76 = arith.constant dense<0.000000e+00> : vector<256x32xf32>
    %140 = tpu.matmul %2, %129, %cst_76 {dimension_numbers = #tpu.dot_dimension_numbers<[1], [0], [0], [1], [0, 0, 1, 1], [], []>} : vector<256x32xf32>, vector<32x32xf32>, vector<256x32xf32> -> vector<256x32xf32>
    %141 = arith.mulf %140, %4 : vector<256x32xf32>
    %cst_77 = arith.constant dense<0.000000e+00> : vector<32x32xf32>
    %142 = tpu.matmul %139, %141, %cst_77 {dimension_numbers = #tpu.dot_dimension_numbers<[1], [0], [0], [1], [0, 0, 1, 1], [], []>} : vector<32x256xf32>, vector<256x32xf32>, vector<32x32xf32> -> vector<32x32xf32>
    %cst_78 = arith.constant dense<0.000000e+00> : vector<32x32xf32>
    %143 = tpu.matmul %139, %4, %cst_78 {dimension_numbers = #tpu.dot_dimension_numbers<[1], [0], [0], [1], [0, 0, 1, 1], [], []>} : vector<32x256xf32>, vector<256x32xf32>, vector<32x32xf32> -> vector<32x32xf32>
    %144 = arith.divf %142, %143 : vector<32x32xf32>
    %cst_79 = arith.constant dense<0.000000e+00> : vector<32x32xf32>
    %145 = tpu.matmul %144, %109, %cst_79 {dimension_numbers = #tpu.dot_dimension_numbers<[1], [0], [0], [1], [0, 0, 1, 1], [], []>} : vector<32x32xf32>, vector<32x32xf32>, vector<32x32xf32> -> vector<32x32xf32>
    %146 = vector.broadcast %118 : vector<1x32xf32> to vector<32x32xf32>
    %147 = arith.addf %145, %146 : vector<32x32xf32>
    %148 = arith.addf %103, %147 : vector<32x32xf32>
    %cst_80 = arith.constant dense<0.000000e+00> : vector<32xf32>
    %149 = vector.multi_reduction <add>, %148, %cst_80 [1] : vector<32x32xf32> to vector<32xf32>
    %150 = vector.shape_cast %149 : vector<32xf32> to vector<32x1xf32>
    %cst_81 = arith.constant 3.200000e+01 : f32
    %151 = vector.broadcast %cst_81 : f32 to vector<32x1xf32>
    %152 = arith.divf %150, %151 : vector<32x1xf32>
    %153 = vector.broadcast %152 : vector<32x1xf32> to vector<32x32xf32>
    %154 = arith.subf %148, %153 : vector<32x32xf32>
    %155 = arith.mulf %154, %154 : vector<32x32xf32>
    %cst_82 = arith.constant dense<0.000000e+00> : vector<32xf32>
    %156 = vector.multi_reduction <add>, %155, %cst_82 [1] : vector<32x32xf32> to vector<32xf32>
    %157 = vector.shape_cast %156 : vector<32xf32> to vector<32x1xf32>
    %cst_83 = arith.constant 3.200000e+01 : f32
    %158 = vector.broadcast %cst_83 : f32 to vector<32x1xf32>
    %159 = arith.divf %157, %158 : vector<32x1xf32>
    %160 = vector.broadcast %152 : vector<32x1xf32> to vector<32x32xf32>
    %161 = arith.subf %148, %160 : vector<32x32xf32>
    %cst_84 = arith.constant 9.99999974E-6 : f32
    %162 = vector.broadcast %cst_84 : f32 to vector<32x1xf32>
    %163 = arith.addf %159, %162 : vector<32x1xf32>
    %164 = math.rsqrt %163 : vector<32x1xf32>
    %165 = vector.broadcast %164 : vector<32x1xf32> to vector<32x32xf32>
    %166 = arith.mulf %161, %165 : vector<32x32xf32>
    %167 = vector.broadcast %119 : vector<1x32xf32> to vector<32x32xf32>
    %168 = arith.mulf %166, %167 : vector<32x32xf32>
    %169 = vector.broadcast %120 : vector<1x32xf32> to vector<32x32xf32>
    %170 = arith.addf %168, %169 : vector<32x32xf32>
    %cst_85 = arith.constant dense<0.000000e+00> : vector<32x64xf32>
    %171 = tpu.matmul %170, %111, %cst_85 {dimension_numbers = #tpu.dot_dimension_numbers<[1], [0], [0], [1], [0, 0, 1, 1], [], []>} : vector<32x32xf32>, vector<32x64xf32>, vector<32x64xf32> -> vector<32x64xf32>
    %172 = vector.broadcast %117 : vector<1x64xf32> to vector<32x64xf32>
    %173 = arith.addf %171, %172 : vector<32x64xf32>
    %cst_86 = arith.constant 0.000000e+00 : f32
    %174 = vector.broadcast %cst_86 : f32 to vector<32x64xf32>
    %175 = arith.maximumf %173, %174 : vector<32x64xf32>
    %cst_87 = arith.constant dense<0.000000e+00> : vector<32x32xf32>
    %176 = tpu.matmul %175, %113, %cst_87 {dimension_numbers = #tpu.dot_dimension_numbers<[1], [0], [0], [1], [0, 0, 1, 1], [], []>} : vector<32x64xf32>, vector<64x32xf32>, vector<32x32xf32> -> vector<32x32xf32>
    %177 = vector.broadcast %121 : vector<1x32xf32> to vector<32x32xf32>
    %178 = arith.addf %176, %177 : vector<32x32xf32>
    %179 = arith.addf %170, %178 : vector<32x32xf32>
    %cst_88 = arith.constant dense<0.000000e+00> : vector<32xf32>
    %180 = vector.multi_reduction <add>, %179, %cst_88 [1] : vector<32x32xf32> to vector<32xf32>
    %181 = vector.shape_cast %180 : vector<32xf32> to vector<32x1xf32>
    %cst_89 = arith.constant 3.200000e+01 : f32
    %182 = vector.broadcast %cst_89 : f32 to vector<32x1xf32>
    %183 = arith.divf %181, %182 : vector<32x1xf32>
    %184 = vector.broadcast %183 : vector<32x1xf32> to vector<32x32xf32>
    %185 = arith.subf %179, %184 : vector<32x32xf32>
    %186 = arith.mulf %185, %185 : vector<32x32xf32>
    %cst_90 = arith.constant dense<0.000000e+00> : vector<32xf32>
    %187 = vector.multi_reduction <add>, %186, %cst_90 [1] : vector<32x32xf32> to vector<32xf32>
    %188 = vector.shape_cast %187 : vector<32xf32> to vector<32x1xf32>
    %cst_91 = arith.constant 3.200000e+01 : f32
    %189 = vector.broadcast %cst_91 : f32 to vector<32x1xf32>
    %190 = arith.divf %188, %189 : vector<32x1xf32>
    %191 = vector.broadcast %183 : vector<32x1xf32> to vector<32x32xf32>
    %192 = arith.subf %179, %191 : vector<32x32xf32>
    %cst_92 = arith.constant 9.99999974E-6 : f32
    %193 = vector.broadcast %cst_92 : f32 to vector<32x1xf32>
    %194 = arith.addf %190, %193 : vector<32x1xf32>
    %195 = math.rsqrt %194 : vector<32x1xf32>
    %196 = vector.broadcast %195 : vector<32x1xf32> to vector<32x32xf32>
    %197 = arith.mulf %192, %196 : vector<32x32xf32>
    %198 = vector.broadcast %122 : vector<1x32xf32> to vector<32x32xf32>
    %199 = arith.mulf %197, %198 : vector<32x32xf32>
    %200 = vector.broadcast %123 : vector<1x32xf32> to vector<32x32xf32>
    %201 = arith.addf %199, %200 : vector<32x32xf32>
    %c0_93 = arith.constant 0 : index
    %c0_94 = arith.constant 0 : index
    %202 = vector.load %arg8[%c0_93, %c0_94] : memref<32x8xf32, #tpu.memory_space<vmem>>, vector<32x8xf32>
    %cst_95 = arith.constant dense<0.000000e+00> : vector<32x8xf32>
    %203 = tpu.matmul %201, %202, %cst_95 {dimension_numbers = #tpu.dot_dimension_numbers<[1], [0], [0], [1], [0, 0, 1, 1], [], []>} : vector<32x32xf32>, vector<32x8xf32>, vector<32x8xf32> -> vector<32x8xf32>
    %c0_96 = arith.constant 0 : index
    %c0_97 = arith.constant 0 : index
    %204 = vector.load %arg9[%c0_96, %c0_97] : memref<1x8xf32, #tpu.memory_space<vmem>>, vector<1x8xf32>
    %205 = vector.broadcast %204 : vector<1x8xf32> to vector<32x8xf32>
    %206 = arith.addf %203, %205 : vector<32x8xf32>
    %c0_98 = arith.constant 0 : index
    %c0_99 = arith.constant 0 : index
    %207 = vector.load %arg15[%c0_98, %c0_99] : memref<32x8xf32, #tpu.memory_space<vmem>>, vector<32x8xf32>
    tpu.vector_store %arg15[%c0_98, %c0_99], %206 {strides = array<i32>} : memref<32x8xf32, #tpu.memory_space<vmem>>, vector<32x8xf32>,
    return
  }
}

</mosaic_0001>

<bundles_post_ra>
// kernel: tpu_custom_call.1
= control target key start
LH: loop header
LB: loop body
LE: loop exit
PB: predicated region body
PF: predicated region fallthrough
CT: control target
= control target key end

     0   :  { %vm171_vm0 = vcmask 261120   ;;  %s4170_s21 = smov 96   ;;  %v4171_v31 = vmov 0.0   ;;  %vm1387_vm1 = vcmask 523264   ;;  %vm2988_vm2 = vcmask 64512   ;;  %s5619_s1 = inlined_call_operand.vmem [shape: f32[2,32,96], index: 1, kind: input, shape index: {}]   ;;  %s5620_s0 = inlined_call_operand.vmem [shape: f32[32,32], index: 0, kind: input, shape index: {}]   ;;  %s5621_s2 = inlined_call_operand.vmem [shape: f32[2,1,96], index: 2, kind: input, shape index: {}]   ;;  %s5622_s10 = inlined_call_operand.vmem [shape: f32[32,256], index: 10, kind: input, shape index: {}]   ;;  %s5623_s11 = inlined_call_operand.vmem [shape: f32[256,32], index: 11, kind: input, shape index: {}]   ;;  %s5624_s12 = inlined_call_operand.vmem [shape: f32[32,256], index: 12, kind: input, shape index: {}]   ;;  %s5625_s13 = inlined_call_operand.vmem [shape: f32[256,32], index: 13, kind: input, shape index: {}]   ;;  %s5626_s14 = inlined_call_operand.vmem [shape: f32[32,256], index: 14, kind: input, shape index: {}]   ;;  %s5627_s3 = inlined_call_operand.vmem [shape: f32[2,32,32], index: 3, kind: input, shape index: {}]   ;;  %s5628_s6 = inlined_call_operand.vmem [shape: f32[2,8,32], index: 6, kind: input, shape index: {}]   ;;  %s5629_s4 = inlined_call_operand.vmem [shape: f32[2,32,64], index: 4, kind: input, shape index: {}]   ;;  %s5630_s5 = inlined_call_operand.vmem [shape: f32[2,64,32], index: 5, kind: input, shape index: {}]   ;;  %s5631_s7 = inlined_call_operand.vmem [shape: f32[2,1,64], index: 7, kind: input, shape index: {}]   ;;  %s5632_s8 = inlined_call_operand.vmem [shape: f32[32,8], index: 8, kind: input, shape index: {}]   ;;  %s5633_s9 = inlined_call_operand.vmem [shape: f32[1,8], index: 9, kind: input, shape index: {}]   ;;  %s5634_s15 = inlined_call_operand.vmem [shape: f32[32,8], index: 15, kind: output, shape index: {}]  }
   0x1   :  { %v142_v0 = vld [vmem:[%s5619_s1] sm:$0xff]  ;;  %v143_v1 = vld [vmem:[%s5619_s1 + $0x8] sm:$0xff]  ;;  %v144_v2 = vld [vmem:[%s5619_s1 + $0x10] sm:$0xff]  ;;  %393 = vmatprep.mubr.f32.mxu1 %v4171_v31 }
   0x2   :  { %v3723_v3 = vpack.c.bf16 %v143_v1, %v142_v0  ;;  %v145_v4 = vld [vmem:[%s5619_s1 + $0x18] sm:$0xff]  ;;  %v4268_v5 = vld [vmem:[%s5620_s0] sm:$0xff]  ;;  %v4275_v7 = vld [vmem:[%s5620_s0 + $0x8] sm:$0xff] }
   0x3   :  { %v3727_v6 = vpack.c.bf16 %v145_v4, %v144_v2  ;;  %3477 = vmatprep.mubr.msk.f32.mxu0 %vm171_vm0, %v4268_v5  ;;  %v4280_v8 = vld [vmem:[%s5620_s0 + $0x10] sm:$0xff]  ;;  %v4289_v9 = vld [vmem:[%s5620_s0 + $0x18] sm:$0xff]  ;;  %v55_v10 = vld [vmem:[%s5622_s10 + $0x8] sm:$0xff] }
   0x4   :  { %3724 = vmatprep.subr.bf16.mxu0 %v3723_v3  ;;  %v57_v11 = vld [vmem:[%s5622_s10 + $0x18] sm:$0xff]  ;;  %v2997_v12 = vld [vmem:[%s5621_s2] ss:$0 sm:$0xff]  ;;  %v56_v15 = vld [vmem:[%s5622_s10 + $0x10] sm:$0xff] }
   0x5   :  { %3726 = vmatpush3.bf16.msra.mxu0 %v3723_v3  ;;  %v4302_v13 = vpack.c.bf16 %v57_v11, %v55_v10  ;;  %v54_v14 = vld [vmem:[%s5622_s10] sm:$0xff]  ;;  %v59_v20 = vld [vmem:[%s5622_s10 + $0x28] sm:$0xff]  ;;  %v61_v21 = vld [vmem:[%s5622_s10 + $0x38] sm:$0xff] }
   0x6   :  { %3728 = vmatprep.subr.bf16.mxu0 %v3727_v6  ;;  %v4310_v17 = vpack.c.bf16 %v56_v15, %v54_v14  ;;  %v4322_v22 = vpack.c.bf16 %v61_v21, %v59_v20  ;;  %v58_v23 = vld [vmem:[%s5622_s10 + $0x20] sm:$0xff]  ;;  %v60_v24 = vld [vmem:[%s5622_s10 + $0x30] sm:$0xff]  ;;  %s4172_s10 = smov 64   ;;  %v63_v51 = vld [vmem:[%s5623_s11 + $0x8] sm:$0xff] }
   0x7   :  { %3732 = vmatprep.subr.bf16.mxu1 %v4302_v13  ;;  %v4332_v26 = vpack.c.bf16 %v60_v24, %v58_v23  ;;  %v62_v50 = vld [vmem:[%s5623_s11] sm:$0xff]  ;;  %v64_v52 = vld [vmem:[%s5623_s11 + $0x10] sm:$0xff]  ;;  %v65_v53 = vld [vmem:[%s5623_s11 + $0x18] sm:$0xff] }
   0x8   :  { %3734 = vmatpush1.bf16.msra.mxu1 %v4310_v17  ;;  %v66_v54 = vld [vmem:[%s5623_s11 + $0x20] sm:$0xff]  ;;  %v67_v55 = vld [vmem:[%s5623_s11 + $0x28] sm:$0xff]  ;;  %v68_v56 = vld [vmem:[%s5623_s11 + $0x30] sm:$0xff] }
   0x9   :  { %3730 = vmatpush3.bf16.msra.mxu0 %v3727_v6  ;;  %3736 = vmatprep.subr.bf16.mxu1 %v4322_v22  ;;  %v69_v57 = vld [vmem:[%s5623_s11 + $0x38] sm:$0xff]  ;;  %v70_v58 = vld [vmem:[%s5623_s11 + $0x40] sm:$0xff]  ;;  %v71_v59 = vld [vmem:[%s5623_s11 + $0x48] sm:$0xff] }
   0xa   :  { %v72_v60 = vld [vmem:[%s5623_s11 + $0x50] sm:$0xff]  ;;  %v73_v61 = vld [vmem:[%s5623_s11 + $0x58] sm:$0xff]  ;;  %v74_v62 = vld [vmem:[%s5623_s11 + $0x60] sm:$0xff] }
   0xb   :  { %v75_v63 = vld [vmem:[%s5623_s11 + $0x68] sm:$0xff]  ;;  %v76_v0 = vld [vmem:[%s5623_s11 + $0x70] sm:$0xff]  ;;  %v77_v1 = vld [vmem:[%s5623_s11 + $0x78] sm:$0xff] }
   0xc   :  { %3478 = vmatmul.mubr.msk.f32.vlgmr.msra.gmra.mrb[0].mxu0 %vm171_vm0, %v4275_v7  ;;  %3738 = vmatpush1.bf16.msra.mxu1 %v4332_v26  ;;  %v78_v2 = vld [vmem:[%s5623_s11 + $0x80] sm:$0xff]  ;;  %v79_v3 = vld [vmem:[%s5623_s11 + $0x88] sm:$0xff]  ;;  %v80_v4 = vld [vmem:[%s5623_s11 + $0x90] sm:$0xff] }
   0xd   :  { %3480 = vmatprep.mubr.msk.f32.mxu0 %vm171_vm0, %v4280_v8  ;;  %v81_v6 = vld [vmem:[%s5623_s11 + $0x98] sm:$0xff]  ;;  %v82_v10 = vld [vmem:[%s5623_s11 + $0xa0] sm:$0xff]  ;;  %v83_v11 = vld [vmem:[%s5623_s11 + $0xa8] sm:$0xff] }
   0xe   :  { %v85_v14 = vld [vmem:[%s5623_s11 + $0xb8] sm:$0xff]  ;;  %v86_v15 = vld [vmem:[%s5623_s11 + $0xc0] sm:$0xff]  ;;  %v91_v23 = vld [vmem:[%s5623_s11 + $0xe8] sm:$0xff] }
   0xf   :  { %v89_v20 = vld [vmem:[%s5623_s11 + $0xd8] sm:$0xff]  ;;  %v90_v21 = vld [vmem:[%s5623_s11 + $0xe0] sm:$0xff]  ;;  %v92_v24 = vld [vmem:[%s5623_s11 + $0xf0] sm:$0xff] }
  0x10   :  { %3481 = vmatmul.mubr.msk.f32.gmra.mrb[2].mxu0 %vm171_vm0, %v4289_v9 }
  0x11   :  { %498 = vmatprep.mubr.f32.mxu0 %v4171_v31 }
  0xdf   :  { %v3479_v16 = vpop.f32.mrb[0].mxu0 }
  0xe0   :  { %v250_v18 = vpop.f32.mrb[1].mxu0  ;;  %v4335_v28 = vadd.f32 %v3479_v16, %v2997_v12  ;;  %v87_v16 = vld [vmem:[%s5623_s11 + $0xc8] sm:$0xff] }
  0xe1   :  { %v4313_v19 = vadd.f32 %v2997_v12, %v250_v18  ;;  %v88_v18 = vld [vmem:[%s5623_s11 + $0xd0] sm:$0xff] }
  0xe3   :  { %v3482_v25 = vpop.f32.mrb[2].mxu0  ;;  %273 = vrot.lane.b32.xlu0 %v4313_v19, %s4170_s21  ;;  %v3990_v32 = vpack.i.bf16 %v4335_v28, %v4313_v19 }
  0xe4   :  { %v260_v27 = vpop.f32.mrb[3].mxu0  ;;  %v4340_v30 = vadd.f32 %v3482_v25, %v2997_v12  ;;  %v93_v25 = vld [vmem:[%s5623_s11 + $0xf8] sm:$0xff] }
  0xe5   :  { %v4337_v29 = vadd.f32 %v2997_v12, %v260_v27  ;;  %v84_v12 = vld [vmem:[%s5623_s11 + $0xb0] sm:$0xff] }
  0xe7   :  { %277 = vrot.lane.b32.xlu1 %v4337_v29, %s4170_s21  ;;  %275 = vrot.lane.b32.xlu0 %v4335_v28, %s4170_s21  ;;  %v3995_v33 = vpack.i.bf16 %v4340_v30, %v4337_v29 }
  0xeb   :  { %279 = vrot.lane.b32.xlu1 %v4340_v30, %s4170_s21 }
  0xef   :  { %3991 = vrot.lane.b32.xlu1 %v3990_v32, %s4172_s10 }
  0xf3   :  { %3996 = vrot.lane.b32.xlu1 %v3995_v33, %s4172_s10  ;;  %v94_v33 = vld [vmem:[%s5624_s12] sm:$0xff] }
 0x155   :  { %v274_v34 = vpop.permute.xlu0 %273 }
 0x156   :  { %285 = vxpose.xlu0.b32.start [1/4] (short) (narrow) %v274_v34, 32  ;;  %v96_v34 = vld [vmem:[%s5624_s12 + $0x10] sm:$0xff] }
 0x159   :  { %v278_v35 = vpop.permute.xlu1 %277  ;;  %v276_v36 = vpop.permute.xlu0 %275 }
 0x15a   :  { %286 = vxpose.xlu0.b32.cont [2/4] (short) (narrow) %v276_v36, 32  ;;  %v97_v36 = vld [vmem:[%s5624_s12 + $0x18] sm:$0xff] }
 0x15d   :  { %v280_v37 = vpop.permute.xlu1 %279 }
 0x15e   :  { %287 = vxpose.xlu0.b32.cont [3/4] (short) (narrow) %v278_v35, 32  ;;  %v95_v35 = vld [vmem:[%s5624_s12 + $0x8] sm:$0xff] }
 0x161   :  { %v3992_v38 = vpop.permute.xlu1 %3991 }
 0x162   :  { %v3994_v39 = vunpack.i.h.bf16 %v3992_v38  ;;  %v3993_v40 = vunpack.i.l.bf16 %v3992_v38  ;;  %288 = vxpose.xlu0.b32.end [4/4] (short) (narrow) %v280_v37, 32 }
 0x164   :  { %v3747_v41 = vpack.c.bf16 %v3994_v39, %v3993_v40 }
 0x165   :  { %v3997_v42 = vpop.permute.xlu1 %3996 }
 0x166   :  { %3748 = vmatprep.subr.bf16.mxu1 %v3747_v41  ;;  %v3999_v43 = vunpack.i.h.bf16 %v3997_v42  ;;  %v3998_v44 = vunpack.i.l.bf16 %v3997_v42 }
 0x168   :  { %v3751_v46 = vpack.c.bf16 %v3999_v43, %v3998_v44 }
 0x1d6   :  { %v301_v45 = vpop.trf.xlu0 }
 0x1d7   :  { %3002 = vmatmul.mubr.msk.f32.vlgmr.msra.gmra.mrb[0].mxu1 %vm171_vm0, %v301_v45 }
 0x1d8   :  { %3750 = vmatpush3.bf16.msra.mxu1 %v3747_v41  ;;  %399 = vmatprep.mubr.f32.mxu1 %v4171_v31 }
 0x1d9   :  { %3752 = vmatprep.subr.bf16.mxu1 %v3751_v46 }
 0x1da   :  { %v302_v47 = vpop.trf.xlu0 }
 0x1db   :  { %3003 = vmatmul.mubr.msk.f32.gmra.mrb[2].mxu1 %vm171_vm0, %v302_v47  ;;  %v98_v47 = vld [vmem:[%s5624_s12 + $0x20] sm:$0xff] }
 0x1dc   :  { %3754 = vmatpush3.bf16.msra.mxu1 %v3751_v46  ;;  %405 = vmatprep.mubr.f32.mxu1 %v4171_v31 }
 0x1de   :  { %v303_v48 = vpop.trf.xlu0 }
 0x1df   :  { %3004 = vmatmul.mubr.msk.f32.gmra.mrb[4].mxu1 %vm171_vm0, %v303_v48  ;;  %v100_v48 = vld [vmem:[%s5624_s12 + $0x30] sm:$0xff] }
 0x1e0   :  { %411 = vmatprep.mubr.f32.mxu1 %v4171_v31 }
 0x1e2   :  { %v304_v49 = vpop.trf.xlu0 }
 0x1e3   :  { %3005 = vmatmul.mubr.msk.f32.gmra.mrb[6].mxu1 %vm171_vm0, %v304_v49  ;;  %v99_v49 = vld [vmem:[%s5624_s12 + $0x28] sm:$0xff] }
 0x1e4   :  { %3491 = vmatprep.mubr.msk.f32.mxu1 %vm171_vm0, %v62_v50  ;;  %v101_v50 = vld [vmem:[%s5624_s12 + $0x38] sm:$0xff] }
 0x1e7   :  { %3492 = vmatmul.mubr.msk.f32.vlgmr.msra.gmra.mrb[8].mxu1 %vm171_vm0, %v63_v51 }
 0x1e8   :  { %3494 = vmatprep.mubr.msk.f32.mxu1 %vm171_vm0, %v64_v52 }
 0x1eb   :  { %3495 = vmatmul.mubr.msk.f32.gmra.mrb[10].mxu1 %vm171_vm0, %v65_v53 }
 0x1ec   :  { %3497 = vmatprep.mubr.msk.f32.mxu1 %vm171_vm0, %v66_v54 }
 0x1ef   :  { %3498 = vmatmul.mubr.msk.f32.gmra.mrb[12].mxu1 %vm171_vm0, %v67_v55 }
 0x1f0   :  { %3500 = vmatprep.mubr.msk.f32.mxu1 %vm171_vm0, %v68_v56 }
 0x1f3   :  { %3501 = vmatmul.mubr.msk.f32.gmra.mrb[14].mxu1 %vm171_vm0, %v69_v57 }
 0x1f4   :  { %3503 = vmatprep.mubr.msk.f32.mxu1 %vm171_vm0, %v70_v58 }
 0x1f7   :  { %3504 = vmatmul.mubr.msk.f32.gmra.mrb[16].mxu1 %vm171_vm0, %v71_v59 }
 0x1f8   :  { %3506 = vmatprep.mubr.msk.f32.mxu1 %vm171_vm0, %v72_v60 }
 0x1fb   :  { %3507 = vmatmul.mubr.msk.f32.gmra.mrb[18].mxu1 %vm171_vm0, %v73_v61 }
 0x1fc   :  { %3509 = vmatprep.mubr.msk.f32.mxu1 %vm171_vm0, %v74_v62 }
 0x1ff   :  { %3510 = vmatmul.mubr.msk.f32.gmra.mrb[20].mxu1 %vm171_vm0, %v75_v63  ;;  %v4550_v63 = vld [vmem:[%s5625_s13 + $0x10] sm:$0xff] }
 0x200   :  { %3512 = vmatprep.mubr.msk.f32.mxu1 %vm171_vm0, %v76_v0 }
 0x203   :  { %3513 = vmatmul.mubr.msk.f32.gmra.mrb[22].mxu1 %vm171_vm0, %v77_v1 }
 0x204   :  { %3515 = vmatprep.mubr.msk.f32.mxu1 %vm171_vm0, %v78_v2  ;;  %v4558_v2 = vld [vmem:[%s5625_s13 + $0x28] sm:$0xff] }
 0x207   :  { %3516 = vmatmul.mubr.msk.f32.gmra.mrb[24].mxu1 %vm171_vm0, %v79_v3 }
 0x208   :  { %3518 = vmatprep.mubr.msk.f32.mxu1 %vm171_vm0, %v80_v4 }
 0x20b   :  { %3519 = vmatmul.mubr.msk.f32.gmra.mrb[26].mxu1 %vm171_vm0, %v81_v6  ;;  %v4568_v6 = vld [vmem:[%s5625_s13 + $0x20] sm:$0xff] }
 0x20c   :  { %3521 = vmatprep.mubr.msk.f32.mxu1 %vm171_vm0, %v82_v10 }
 0x20f   :  { %3522 = vmatmul.mubr.msk.f32.gmra.mrb[28].mxu1 %vm171_vm0, %v83_v11 }
 0x210   :  { %3524 = vmatprep.mubr.msk.f32.mxu1 %vm171_vm0, %v84_v12 }
 0x213   :  { %3525 = vmatmul.mubr.msk.f32.gmra.mrb[30].mxu1 %vm171_vm0, %v85_v14 }
 0x214   :  { %3527 = vmatprep.mubr.msk.f32.mxu1 %vm171_vm0, %v86_v15 }
 0x217   :  { %3528 = vmatmul.mubr.msk.f32.gmra.mrb[32].mxu1 %vm171_vm0, %v87_v16  ;;  %v4581_v16 = vld [vmem:[%s5625_s13 + $0x38] sm:$0xff] }
 0x218   :  { %3530 = vmatprep.mubr.msk.f32.mxu1 %vm171_vm0, %v88_v18  ;;  %v4586_v18 = vld [vmem:[%s5625_s13 + $0x30] sm:$0xff] }
 0x21b   :  { %3531 = vmatmul.mubr.msk.f32.gmra.mrb[34].mxu1 %vm171_vm0, %v89_v20 }
 0x21c   :  { %3533 = vmatprep.mubr.msk.f32.mxu1 %vm171_vm0, %v90_v21 }
 0x21f   :  { %3534 = vmatmul.mubr.msk.f32.gmra.mrb[36].mxu1 %vm171_vm0, %v91_v23 }
 0x220   :  { %3536 = vmatprep.mubr.msk.f32.mxu1 %vm171_vm0, %v92_v24 }
 0x223   :  { %3537 = vmatmul.mubr.msk.f32.gmra.mrb[38].mxu1 %vm171_vm0, %v93_v25 }
 0x2aa   :  { %v395_v27 = vpop.f32.mrb[0].mxu1 }
 0x2ab   :  { %v397_v32 = vpop.f32.mrb[1].mxu1  ;;  %v418_v38 = vmul.f32 %v395_v27, %v94_v33  ;;  %v4599_v27 = vld [vmem:[%s5625_s13 + $0x48] sm:$0xff] }
 0x2ac   :  { %v419_v41 = vmul.f32 %v397_v32, %v95_v35  ;;  %v4604_v32 = vld [vmem:[%s5625_s13 + $0x40] sm:$0xff] }
 0x2ae   :  { %v401_v37 = vpop.f32.mrb[2].mxu1 }
 0x2af   :  { %v420_v39 = vmul.f32 %v401_v37, %v96_v34  ;;  %v403_v40 = vpop.f32.mrb[3].mxu1 }
 0x2b0   :  { %v421_v42 = vmul.f32 %v403_v40, %v97_v36 }
 0x2b1   :  { %v3741_v43 = vpack.c.bf16 %v420_v39, %v418_v38  ;;  %v4617_v38 = vld [vmem:[%s5625_s13 + $0x58] sm:$0xff]  ;;  %v4622_v39 = vld [vmem:[%s5625_s13 + $0x50] sm:$0xff] }
 0x2b2   :  { %v3739_v44 = vpack.c.bf16 %v421_v42, %v419_v41  ;;  %v407_v45 = vpop.f32.mrb[4].mxu1 }
 0x2b3   :  { %v409_v46 = vpop.f32.mrb[5].mxu1  ;;  %v422_v52 = vmul.f32 %v407_v45, %v98_v47  ;;  %v4635_v45 = vld [vmem:[%s5625_s13 + $0x68] sm:$0xff] }
 0x2b4   :  { %3740 = vmatprep.subr.bf16.mxu0 %v3739_v44  ;;  %v423_v55 = vmul.f32 %v409_v46, %v99_v49  ;;  %v4640_v46 = vld [vmem:[%s5625_s13 + $0x60] sm:$0xff] }
 0x2b5   :  { %3742 = vmatpush1.bf16.msra.mxu0 %v3741_v43 }
 0x2b6   :  { %v413_v51 = vpop.f32.mrb[6].mxu1 }
 0x2b7   :  { %v424_v53 = vmul.f32 %v413_v51, %v100_v48  ;;  %v415_v54 = vpop.f32.mrb[7].mxu1 }
 0x2b8   :  { %v425_v56 = vmul.f32 %v415_v54, %v101_v50 }
 0x2b9   :  { %v3745_v57 = vpack.c.bf16 %v424_v53, %v422_v52  ;;  %v4653_v52 = vld [vmem:[%s5625_s13 + $0x78] sm:$0xff]  ;;  %v4658_v53 = vld [vmem:[%s5625_s13 + $0x70] sm:$0xff] }
 0x2ba   :  { %v3743_v58 = vpack.c.bf16 %v425_v56, %v423_v55  ;;  %v3493_v59 = vpop.f32.mrb[8].mxu1 }
 0x2bb   :  { %v733_v60 = vpop.f32.mrb[9].mxu1 }
 0x2bc   :  { %3744 = vmatprep.subr.bf16.mxu0 %v3743_v58 }
 0x2bd   :  { %3746 = vmatpush1.bf16.msra.mxu0 %v3745_v57 }
 0x2be   :  { %v3496_v62 = vpop.f32.mrb[10].mxu1 }
 0x2bf   :  { %v743_v1 = vpop.f32.mrb[11].mxu1 }
 0x2c0   :  { %3006 = vmatmul.mubr.msk.f32.vlgmr.msra.gmra.mrb[4].mxu0 %vm171_vm0, %v4313_v19  ;;  %v4529_v19 = vld [vmem:[%s5625_s13 + $0x8] sm:$0xff]  ;;  %v4563_v4 = vmul.f32 %v743_v1, %v4550_v63 }
 0x2c1   :  { %504 = vmatprep.mubr.f32.mxu0 %v4171_v31  ;;  %v4542_v61 = vmul.f32 %v3493_v59, %v4529_v19  ;;  %v4671_v59 = vld [vmem:[%s5625_s13 + $0x88] sm:$0xff] }
 0x2c2   :  { %v3499_v10 = vpop.f32.mrb[12].mxu1 }
 0x2c3   :  { %v4573_v12 = vmul.f32 %v3499_v10, %v4558_v2  ;;  %v753_v14 = vpop.f32.mrb[13].mxu1 }
 0x2c4   :  { %3007 = vmatmul.mubr.msk.f32.gmra.mrb[6].mxu0 %vm171_vm0, %v4335_v28  ;;  %v4534_v28 = vld [vmem:[%s5625_s13] sm:$0xff]  ;;  %v4576_v15 = vmul.f32 %v753_v14, %v4568_v6  ;;  %v4685_v14 = vld [vmem:[%s5625_s13 + $0x98] sm:$0xff] }
 0x2c5   :  { %510 = vmatprep.mubr.f32.mxu0 %v4171_v31 }
 0x2c6   :  { %v3765_v20 = vpack.c.bf16 %v4573_v12, %v4576_v15  ;;  %v3502_v21 = vpop.f32.mrb[14].mxu1  ;;  %v4747_v12 = vld [vmem:[%s5625_s13 + $0xd0] sm:$0xff] }
 0x2c7   :  { %v4591_v23 = vmul.f32 %v3502_v21, %v4581_v16  ;;  %v763_v24 = vpop.f32.mrb[15].mxu1  ;;  %v4690_v21 = vld [vmem:[%s5625_s13 + $0x90] sm:$0xff] }
 0x2c8   :  { %3008 = vmatmul.mubr.msk.f32.gmra.mrb[8].mxu0 %vm171_vm0, %v4337_v29  ;;  %v4539_v29 = vld [vmem:[%s5625_s13 + $0x18] sm:$0xff]  ;;  %v4594_v25 = vmul.f32 %v763_v24, %v4586_v18 }
 0x2c9   :  { %516 = vmatprep.mubr.f32.mxu0 %v4171_v31  ;;  %v4553_v0 = vmul.f32 %v3496_v62, %v4539_v29 }
 0x2ca   :  { %v3769_v33 = vpack.c.bf16 %v4591_v23, %v4594_v25  ;;  %v3505_v34 = vpop.f32.mrb[16].mxu1  ;;  %v4762_v23 = vld [vmem:[%s5625_s13 + $0xe0] sm:$0xff] }
 0x2cb   :  { %v3761_v11 = vpack.c.bf16 %v4553_v0, %v4563_v4  ;;  %v4609_v35 = vmul.f32 %v3505_v34, %v4599_v27  ;;  %v773_v36 = vpop.f32.mrb[17].mxu1  ;;  %v4732_v0 = vld [vmem:[%s5625_s13 + $0xc0] sm:$0xff] }
 0x2cc   :  { %3009 = vmatmul.mubr.msk.f32.gmra.mrb[10].mxu0 %vm171_vm0, %v4340_v30  ;;  %v4545_v30 = vmul.f32 %v733_v60, %v4534_v28  ;;  %v4612_v37 = vmul.f32 %v773_v36, %v4604_v32  ;;  %v4676_v60 = vld [vmem:[%s5625_s13 + $0x80] sm:$0xff] }
 0x2ce   :  { %v3757_v3 = vpack.c.bf16 %v4542_v61, %v4545_v30  ;;  %v3773_v40 = vpack.c.bf16 %v4609_v35, %v4612_v37  ;;  %v3508_v41 = vpop.f32.mrb[18].mxu1  ;;  %v4777_v35 = vld [vmem:[%s5625_s13 + $0xf0] sm:$0xff] }
 0x2cf   :  { %v4627_v42 = vmul.f32 %v3508_v41, %v4617_v38  ;;  %v783_v43 = vpop.f32.mrb[19].mxu1 }
 0x2d0   :  { %v4630_v44 = vmul.f32 %v783_v43, %v4622_v39 }
 0x2d2   :  { %v3777_v47 = vpack.c.bf16 %v4627_v42, %v4630_v44  ;;  %v3511_v48 = vpop.f32.mrb[20].mxu1  ;;  %v134_v42 = vld [vmem:[%s5626_s14] sm:$0xff]  ;;  %v135_v44 = vld [vmem:[%s5626_s14 + $0x8] sm:$0xff] }
 0x2d3   :  { %v4645_v49 = vmul.f32 %v3511_v48, %v4635_v45  ;;  %v793_v50 = vpop.f32.mrb[21].mxu1  ;;  %v4697_v48 = vld [vmem:[%s5625_s13 + $0xa8] sm:$0xff] }
 0x2d4   :  { %v4648_v51 = vmul.f32 %v793_v50, %v4640_v46  ;;  %v4702_v50 = vld [vmem:[%s5625_s13 + $0xa0] sm:$0xff] }
 0x2d6   :  { %v3781_v54 = vpack.c.bf16 %v4645_v49, %v4648_v51  ;;  %v3514_v55 = vpop.f32.mrb[22].mxu1  ;;  %v136_v49 = vld [vmem:[%s5626_s14 + $0x10] sm:$0xff]  ;;  %v137_v51 = vld [vmem:[%s5626_s14 + $0x18] sm:$0xff] }
 0x2d7   :  { %v4663_v56 = vmul.f32 %v3514_v55, %v4653_v52  ;;  %v803_v57 = vpop.f32.mrb[23].mxu1 }
 0x2d8   :  { %v4666_v58 = vmul.f32 %v803_v57, %v4658_v53 }
 0x2da   :  { %v3785_v61 = vpack.c.bf16 %v4663_v56, %v4666_v58  ;;  %v3517_v30 = vpop.f32.mrb[24].mxu1 }
 0x2db   :  { %v909_v62 = vmul.f32 %v3517_v30, %v4671_v59  ;;  %v813_v1 = vpop.f32.mrb[25].mxu1 }
 0x2dc   :  { %v908_v10 = vmul.f32 %v813_v1, %v4676_v60 }
 0x2de   :  { %v3755_v24 = vpack.c.bf16 %v909_v62, %v908_v10  ;;  %v3520_v34 = vpop.f32.mrb[26].mxu1  ;;  %v4709_v10 = vld [vmem:[%s5625_s13 + $0xb8] sm:$0xff] }
 0x2df   :  { %v911_v36 = vmul.f32 %v3520_v34, %v4685_v14  ;;  %v823_v41 = vpop.f32.mrb[27].mxu1 }
 0x2e0   :  { %v910_v43 = vmul.f32 %v823_v41, %v4690_v21  ;;  %3756 = vmatprep.subr.bf16.mxu0 %v3755_v24 }
 0x2e1   :  { %3758 = vmatpush3.bf16.msra.mxu0 %v3757_v3  ;;  %v4717_v3 = vld [vmem:[%s5625_s13 + $0xb0] sm:$0xff] }
 0x2e2   :  { %v3759_v55 = vpack.c.bf16 %v911_v36, %v910_v43  ;;  %v3523_v57 = vpop.f32.mrb[28].mxu1 }
 0x2e3   :  { %v913_v30 = vmul.f32 %v3523_v57, %v4697_v48  ;;  %v833_v62 = vpop.f32.mrb[29].mxu1 }
 0x2e4   :  { %v912_v1 = vmul.f32 %v833_v62, %v4702_v50  ;;  %3760 = vmatprep.subr.bf16.mxu0 %v3759_v55  ;;  %v4724_v55 = vld [vmem:[%s5625_s13 + $0xc8] sm:$0xff] }
 0x2e5   :  { %3762 = vmatpush3.bf16.msra.mxu0 %v3761_v11 }
 0x2e6   :  { %v3763_v24 = vpack.c.bf16 %v913_v30, %v912_v1  ;;  %v3526_v34 = vpop.f32.mrb[30].mxu1  ;;  %v4739_v1 = vld [vmem:[%s5625_s13 + $0xd8] sm:$0xff] }
 0x2e7   :  { %v915_v36 = vmul.f32 %v3526_v34, %v4709_v10  ;;  %v843_v41 = vpop.f32.mrb[31].mxu1 }
 0x2e8   :  { %v914_v43 = vmul.f32 %v843_v41, %v4717_v3  ;;  %3764 = vmatprep.subr.bf16.mxu0 %v3763_v24  ;;  %v4754_v41 = vld [vmem:[%s5625_s13 + $0xe8] sm:$0xff] }
 0x2e9   :  { %3766 = vmatpush3.bf16.msra.mxu0 %v3765_v20 }
 0x2ea   :  { %v3767_v4 = vpack.c.bf16 %v915_v36, %v914_v43  ;;  %v3529_v11 = vpop.f32.mrb[32].mxu1 }
 0x2eb   :  { %v917_v57 = vmul.f32 %v3529_v11, %v4724_v55  ;;  %v853_v30 = vpop.f32.mrb[33].mxu1 }
 0x2ec   :  { %v916_v62 = vmul.f32 %v853_v30, %v4732_v0  ;;  %3768 = vmatprep.subr.bf16.mxu0 %v3767_v4 }
 0x2ed   :  { %3770 = vmatpush3.bf16.msra.mxu0 %v3769_v33 }
 0x2ee   :  { %v3771_v15 = vpack.c.bf16 %v917_v57, %v916_v62  ;;  %v3532_v20 = vpop.f32.mrb[34].mxu1  ;;  %v4769_v57 = vld [vmem:[%s5625_s13 + $0xf8] sm:$0xff] }
 0x2ef   :  { %v919_v24 = vmul.f32 %v3532_v20, %v4739_v1  ;;  %v863_v34 = vpop.f32.mrb[35].mxu1 }
 0x2f0   :  { %v918_v36 = vmul.f32 %v863_v34, %v4747_v12  ;;  %3772 = vmatprep.subr.bf16.mxu0 %v3771_v15 }
 0x2f1   :  { %3774 = vmatpush3.bf16.msra.mxu0 %v3773_v40 }
 0x2f2   :  { %v3775_v25 = vpack.c.bf16 %v919_v24, %v918_v36  ;;  %v3535_v33 = vpop.f32.mrb[36].mxu1 }
 0x2f3   :  { %v921_v43 = vmul.f32 %v3535_v33, %v4754_v41  ;;  %v873_v4 = vpop.f32.mrb[37].mxu1  ;;  %v138_v33 = vld [vmem:[%s5626_s14 + $0x20] sm:$0xff] }
 0x2f4   :  { %v920_v11 = vmul.f32 %v873_v4, %v4762_v23  ;;  %3776 = vmatprep.subr.bf16.mxu0 %v3775_v25 }
 0x2f5   :  { %3778 = vmatpush3.bf16.msra.mxu0 %v3777_v47 }
 0x2f6   :  { %v3779_v37 = vpack.c.bf16 %v921_v43, %v920_v11  ;;  %v3538_v40 = vpop.f32.mrb[38].mxu1  ;;  %v139_v43 = vld [vmem:[%s5626_s14 + $0x28] sm:$0xff] }
 0x2f7   :  { %v923_v30 = vmul.f32 %v3538_v40, %v4769_v57  ;;  %v883_v62 = vpop.f32.mrb[39].mxu1 }
 0x2f8   :  { %v922_v15 = vmul.f32 %v883_v62, %v4777_v35  ;;  %3780 = vmatprep.subr.bf16.mxu0 %v3779_v37  ;;  %v140_v62 = vld [vmem:[%s5626_s14 + $0x30] sm:$0xff] }
 0x2f9   :  { %3782 = vmatpush3.bf16.msra.mxu0 %v3781_v54 }
 0x2fa   :  { %v3783_v20 = vpack.c.bf16 %v923_v30, %v922_v15  ;;  %v141_v15 = vld [vmem:[%s5626_s14 + $0x38] sm:$0xff] }
 0x2fc   :  { %3784 = vmatprep.subr.bf16.mxu0 %v3783_v20 }
 0x2fd   :  { %3786 = vmatpush3.bf16.msra.mxu0 %v3785_v61 }
 0x393   :  { %v500_v47 = vpop.f32.mrb[4].mxu0 }
 0x394   :  { %v501_v24 = vadd.f32 %v500_v47, %v134_v42  ;;  %v502_v34 = vpop.f32.mrb[5].mxu0 }
 0x395   :  { %v503_v36 = vadd.f32 %v502_v34, %v135_v44 }
 0x397   :  { %v506_v54 = vpop.f32.mrb[6].mxu0  ;;  %v523_v56 = vmax.f32 %v501_v24, %v503_v36 }
 0x398   :  { %v507_v58 = vadd.f32 %v506_v54, %v136_v49  ;;  %v508_v61 = vpop.f32.mrb[7].mxu0  ;;  %v147_v54 = vld [vmem:[%s5627_s3] sm:$0xff] }
 0x399   :  { %v509_v25 = vadd.f32 %v508_v61, %v137_v51  ;;  %524 = vmax.xlane.f32.xlu1 %v523_v56  ;;  %v4813_v51 = vpack.c.bf16 %v4671_v59, %v4676_v60  ;;  %v148_v56 = vld [vmem:[%s5627_s3 + $0x8] sm:$0xff] }
 0x39a   :  { %v3819_v61 = vpack.c.bf16 %v148_v56, %v147_v54 }
 0x39b   :  { %v512_v4 = vpop.f32.mrb[8].mxu0  ;;  %v526_v11 = vmax.f32 %v507_v58, %v509_v25  ;;  %3788 = vmatprep.subr.bf16.mxu0 %v4813_v51 }
 0x39c   :  { %v513_v37 = vadd.f32 %v512_v4, %v138_v33  ;;  %v514_v40 = vpop.f32.mrb[9].mxu0  ;;  %3820 = vmatprep.subr.bf16.mxu1 %v3819_v61 }
 0x39d   :  { %v515_v30 = vadd.f32 %v514_v40, %v139_v43  ;;  %527 = vmax.xlane.f32.xlu0 %v526_v11  ;;  %3822 = vmatpush3.bf16.msra.mxu1 %v3819_v61 }
 0x39f   :  { %v518_v20 = vpop.f32.mrb[10].mxu0  ;;  %v529_v42 = vmax.f32 %v513_v37, %v515_v30 }
 0x3a0   :  { %v519_v44 = vadd.f32 %v518_v20, %v140_v62  ;;  %v520_v47 = vpop.f32.mrb[11].mxu0 }
 0x3a1   :  { %v521_v34 = vadd.f32 %v520_v47, %v141_v15  ;;  %530 = vmax.xlane.f32.xlu1 %v529_v42 }
 0x3a3   :  { %v532_v49 = vmax.f32 %v519_v44, %v521_v34 }
 0x3a5   :  { %533 = vmax.xlane.f32.xlu1 %v532_v49 }
 0x426   :  { %v525_v33 = vpop.xlane.xlu1 %524 }
 0x427   :  { %v535_v43 = vsub.f32 %v501_v24, %v525_v33  ;;  %v536_v4 = vsub.f32 %v503_v36, %v525_v33 }
 0x429   :  { %v543_v11 = vmul.f32 1.442695, %v535_v43  ;;  %v545_v40 = vmul.f32 1.442695, %v536_v4 }
 0x42a   :  { %v528_v59 = vpop.xlane.xlu0 %527 }
 0x42b   :  { %4010 = vpow2.f32 %v543_v11  ;;  %v537_v60 = vsub.f32 %v507_v58, %v528_v59  ;;  %v538_v62 = vsub.f32 %v509_v25, %v528_v59  ;;  %v4824_v58 = vpack.c.bf16 %v4529_v19, %v4534_v28 }
 0x42c   :  { %4012 = vpow2.f32 %v545_v40  ;;  %v4838_v28 = vpack.c.bf16 %v4697_v48, %v4702_v50  ;;  %v4852_v50 = vpack.c.bf16 %v4581_v16, %v4586_v18  ;;  %v4868_v16 = vpack.c.bf16 %v4739_v1, %v4747_v12 }
 0x42d   :  { %v547_v15 = vmul.f32 1.442695, %v537_v60  ;;  %v549_v20 = vmul.f32 1.442695, %v538_v62  ;;  %v4872_v18 = vpack.c.bf16 %v4617_v38, %v4622_v39  ;;  %v4888_v38 = vpack.c.bf16 %v4769_v57, %v4777_v35 }
 0x42e   :  { %v531_v42 = vpop.xlane.xlu1 %530  ;;  %v4892_v39 = vpack.c.bf16 %v4653_v52, %v4658_v53 }
 0x42f   :  { %4014 = vpow2.f32 %v547_v15  ;;  %v539_v47 = vsub.f32 %v513_v37, %v531_v42  ;;  %v540_v49 = vsub.f32 %v515_v30, %v531_v42  ;;  %v4828_v37 = vpack.c.bf16 %v4685_v14, %v4690_v21 }
 0x430   :  { %4016 = vpow2.f32 %v549_v20  ;;  %v4842_v21 = vpack.c.bf16 %v4558_v2, %v4568_v6  ;;  %v4858_v6 = vpack.c.bf16 %v4724_v55, %v4732_v0 }
 0x431   :  { %v551_v54 = vmul.f32 1.442695, %v539_v47  ;;  %v553_v56 = vmul.f32 1.442695, %v540_v49 }
 0x432   :  { %v534_v61 = vpop.xlane.xlu1 %533 }
 0x433   :  { %4018 = vpow2.f32 %v551_v54  ;;  %v541_v24 = vsub.f32 %v519_v44, %v534_v61  ;;  %v542_v36 = vsub.f32 %v521_v34, %v534_v61  ;;  %v4832_v44 = vpack.c.bf16 %v4539_v29, %v4550_v63 }
 0x434   :  { %4020 = vpow2.f32 %v553_v56  ;;  %v4848_v63 = vpack.c.bf16 %v4709_v10, %v4717_v3  ;;  %v4862_v10 = vpack.c.bf16 %v4599_v27, %v4604_v32  ;;  %v4878_v27 = vpack.c.bf16 %v4754_v41, %v4762_v23 }
 0x435   :  { %v4011_v33 = vpop.eup %4010  ;;  %v555_v25 = vmul.f32 1.442695, %v541_v24  ;;  %v557_v43 = vmul.f32 1.442695, %v542_v36  ;;  %v4882_v32 = vpack.c.bf16 %v4635_v45, %v4640_v46  ;;  %v149_v45 = vld [vmem:[%s5627_s3 + $0x10] sm:$0xff]  ;;  %v150_v46 = vld [vmem:[%s5627_s3 + $0x18] sm:$0xff] }
 0x436   :  { %v4013_v4 = vpop.eup %4012  ;;  %v3823_v52 = vpack.c.bf16 %v150_v46, %v149_v45 }
 0x437   :  { %4022 = vpow2.f32 %v555_v25  ;;  %988 = vmatprep.mubr.f32.mxu0 %v4013_v4 }
 0x438   :  { %4024 = vpow2.f32 %v557_v43  ;;  %989 = vmatmul.mubr.f32.vlgmr.msra.gmra.mrb[12].mxu0 %v4011_v33  ;;  %3824 = vmatprep.subr.bf16.mxu1 %v3823_v52 }
 0x439   :  { %v4015_v30 = vpop.eup %4014  ;;  %3790 = vmatpush3.bf16.msra.mxu0 %v4824_v58  ;;  %3826 = vmatpush3.bf16.msra.mxu1 %v3823_v52 }
 0x43a   :  { %v4017_v19 = vpop.eup %4016  ;;  %3792 = vmatprep.subr.bf16.mxu0 %v4828_v37 }
 0x43b   :  { %993 = vmatprep.mubr.f32.mxu0 %v4017_v19 }
 0x43c   :  { %994 = vmatmul.mubr.f32.gmra.mrb[14].mxu0 %v4015_v30 }
 0x43d   :  { %v4019_v14 = vpop.eup %4018  ;;  %3794 = vmatpush3.bf16.msra.mxu0 %v4832_v44 }
 0x43e   :  { %v4021_v29 = vpop.eup %4020  ;;  %3796 = vmatprep.subr.bf16.mxu0 %v4838_v28 }
 0x43f   :  { %998 = vmatprep.mubr.f32.mxu0 %v4021_v29 }
 0x440   :  { %999 = vmatmul.mubr.f32.gmra.mrb[16].mxu0 %v4019_v14 }
 0x441   :  { %v4023_v48 = vpop.eup %4022  ;;  %3798 = vmatpush3.bf16.msra.mxu0 %v4842_v21 }
 0x442   :  { %v4025_v2 = vpop.eup %4024  ;;  %3800 = vmatprep.subr.bf16.mxu0 %v4848_v63 }
 0x443   :  { %1003 = vmatprep.mubr.f32.mxu0 %v4025_v2 }
 0x444   :  { %1004 = vmatmul.mubr.f32.gmra.mrb[18].mxu0 %v4023_v48 }
 0x445   :  { %3802 = vmatpush3.bf16.msra.mxu0 %v4852_v50  ;;  %1073 = vmatprep.mubr.f32.mxu0 %v4013_v4 }
 0x446   :  { %3804 = vmatprep.subr.bf16.mxu0 %v4858_v6 }
 0x449   :  { %3806 = vmatpush3.bf16.msra.mxu0 %v4862_v10 }
 0x44a   :  { %3808 = vmatprep.subr.bf16.mxu0 %v4868_v16 }
 0x44d   :  { %3810 = vmatpush3.bf16.msra.mxu0 %v4872_v18 }
 0x44e   :  { %3812 = vmatprep.subr.bf16.mxu0 %v4878_v27 }
 0x451   :  { %3814 = vmatpush3.bf16.msra.mxu0 %v4882_v32 }
 0x452   :  { %3816 = vmatprep.subr.bf16.mxu0 %v4888_v38 }
 0x455   :  { %3818 = vmatpush3.bf16.msra.mxu0 %v4892_v39 }
 0x458   :  { %1074 = vmatmul.mubr.f32.vlgmr.msra.gmra.mrb[20].mxu0 %v4011_v33 }
 0x459   :  { %1078 = vmatprep.mubr.f32.mxu0 %v4017_v19 }
 0x45c   :  { %1079 = vmatmul.mubr.f32.gmra.mrb[22].mxu0 %v4015_v30 }
 0x45d   :  { %1083 = vmatprep.mubr.f32.mxu0 %v4021_v29 }
 0x460   :  { %1084 = vmatmul.mubr.f32.gmra.mrb[24].mxu0 %v4019_v14  ;;  %v1102_v14 = vlaneseq }
 0x461   :  { %1088 = vmatprep.mubr.f32.mxu0 %v4025_v2  ;;  %v4913_v2 = vld [vmem:[%s5628_s6] sm:$0xff] }
 0x462   :  { %v4907_v29 = vshrl.u32 %v1102_v14, 7 }
 0x464   :  { %1089 = vmatmul.mubr.f32.gmra.mrb[26].mxu0 %v4023_v48  ;;  %v1104_v48 = vsub.s32 0, %v4907_v29 }
 0x466   :  { %v1105_v45 = vrot.slane %v4913_v2, %v1104_v48 }
 0x50b   :  { %v3217_v53 = vpop.f32.mrb[12].mxu0 }
 0x50c   :  { %v3218_v3 = vpop.f32.mrb[13].mxu0 }
 0x50d   :  { %v3219_v55 = vadd.f32 %v3218_v3, %v3217_v53 }
 0x50f   :  { %v3220_v0 = vpop.f32.mrb[14].mxu0 }
 0x510   :  { %v3221_v1 = vpop.f32.mrb[15].mxu0 }
 0x511   :  { %v3222_v12 = vadd.f32 %v3221_v1, %v3220_v0 }
 0x513   :  { %v3223_v41 = vpop.f32.mrb[16].mxu0 }
 0x514   :  { %v3224_v23 = vpop.f32.mrb[17].mxu0 }
 0x515   :  { %v3225_v57 = vadd.f32 %v3224_v23, %v3223_v41 }
 0x517   :  { %v3226_v35 = vpop.f32.mrb[18].mxu0 }
 0x518   :  { %v3227_v34 = vpop.f32.mrb[19].mxu0 }
 0x519   :  { %v3228_v11 = vadd.f32 %v3227_v34, %v3226_v35 }
 0x52b   :  { %v3261_v40 = vpop.f32.mrb[20].mxu0 }
 0x52c   :  { %v3262_v59 = vpop.f32.mrb[21].mxu0 }
 0x52d   :  { %v3263_v60 = vadd.f32 %v3262_v59, %v3261_v40 }
 0x52f   :  { %4026 = vrcp.f32 %v3263_v60  ;;  %v3264_v62 = vpop.f32.mrb[22].mxu0 }
 0x530   :  { %v3265_v15 = vpop.f32.mrb[23].mxu0 }
 0x531   :  { %v3266_v20 = vadd.f32 %v3265_v15, %v3264_v62 }
 0x533   :  { %4028 = vrcp.f32 %v3266_v20  ;;  %v3267_v42 = vpop.f32.mrb[24].mxu0 }
 0x534   :  { %v3268_v47 = vpop.f32.mrb[25].mxu0 }
 0x535   :  { %v3269_v49 = vadd.f32 %v3268_v47, %v3267_v42 }
 0x537   :  { %4030 = vrcp.f32 %v3269_v49  ;;  %v3270_v54 = vpop.f32.mrb[26].mxu0 }
 0x538   :  { %v3271_v56 = vpop.f32.mrb[27].mxu0 }
 0x539   :  { %v4027_v61 = vpop.eup %4026  ;;  %v3272_v24 = vadd.f32 %v3271_v56, %v3270_v54 }
 0x53a   :  { %v1095_v36 = vmul.f32 %v4027_v61, %v3219_v55 }
 0x53b   :  { %4032 = vrcp.f32 %v3272_v24 }
 0x53c   :  { %3547 = vmatprep.mubr.msk.f32.mxu1 %vm171_vm0, %v1095_v36 }
 0x53d   :  { %v4029_v33 = vpop.eup %4028 }
 0x53e   :  { %v1097_v25 = vmul.f32 %v4029_v33, %v3222_v12 }
 0x540   :  { %3548 = vmatmul.mubr.msk.f32.vlgmr.msra.gmra.mrb[40].mxu1 %vm171_vm0, %v1097_v25 }
 0x541   :  { %v4031_v43 = vpop.eup %4030 }
 0x542   :  { %v1099_v4 = vmul.f32 %v4031_v43, %v3225_v57 }
 0x544   :  { %3550 = vmatprep.mubr.msk.f32.mxu1 %vm171_vm0, %v1099_v4 }
 0x545   :  { %v4033_v30 = vpop.eup %4032 }
 0x546   :  { %v1101_v19 = vmul.f32 %v4033_v30, %v3228_v11  ;;  %v151_v30 = vld [vmem:[%s5629_s4] sm:$0xff] }
 0x548   :  { %3551 = vmatmul.mubr.msk.f32.gmra.mrb[42].mxu1 %vm171_vm0, %v1101_v19  ;;  %v152_v19 = vld [vmem:[%s5629_s4 + $0x8] sm:$0xff] }
 0x549   :  { %v3827_v14 = vpack.c.bf16 %v152_v19, %v151_v30 }
 0x54b   :  { %3828 = vmatprep.subr.bf16.mxu0 %v3827_v14 }
 0x54c   :  { %3830 = vmatpush3.bf16.msra.mxu0 %v3827_v14 }
 0x613   :  { %v3549_v46 = vpop.f32.mrb[40].mxu1 }
 0x614   :  { %v1190_v52 = vadd.f32 %v3549_v46, %v1105_v45  ;;  %v1184_v53 = vpop.f32.mrb[41].mxu1  ;;  %v154_v46 = vld [vmem:[%s5629_s4 + $0x18] sm:$0xff] }
 0x615   :  { %v1185_v3 = vadd.f32 %v1184_v53, %v1105_v45  ;;  %v155_v53 = vld [vmem:[%s5630_s5] sm:$0xff] }
 0x616   :  { %v1204_v55 = vadd.f32 %v1190_v52, %v4275_v7 }
 0x617   :  { %v1203_v1 = vadd.f32 %v1185_v3, %v4268_v5  ;;  %v156_v3 = vld [vmem:[%s5630_s5 + $0x8] sm:$0xff] }
 0x618   :  { %v1210_v0 = vsel %vm171_vm0, %v1204_v55, 0.0 }
 0x619   :  { %1211 = vadd.xlane.f32.xlu1 %v1210_v0  ;;  %v1207_v23 = vsel %vm171_vm0, %v1203_v1, 0.0  ;;  %v3835_v0 = vpack.c.bf16 %v156_v3, %v155_v53 }
 0x61b   :  { %v3552_v12 = vpop.f32.mrb[42].mxu1  ;;  %3836 = vmatprep.subr.bf16.mxu1 %v3835_v0 }
 0x61c   :  { %v1194_v41 = vpop.f32.mrb[43].mxu1  ;;  %v1200_v57 = vadd.f32 %v3552_v12, %v1105_v45  ;;  %3838 = vmatpush3.bf16.msra.mxu1 %v3835_v0  ;;  %v161_v0 = vld [vmem:[%s5630_s5 + $0x30] sm:$0xff] }
 0x61d   :  { %v1195_v35 = vadd.f32 %v1194_v41, %v1105_v45  ;;  %1208 = vadd.xlane.f32.xlu1 %v1207_v23  ;;  %v153_v45 = vld [vmem:[%s5629_s4 + $0x10] sm:$0xff]  ;;  %v159_v41 = vld [vmem:[%s5630_s5 + $0x20] sm:$0xff]  ;;  %v160_v23 = vld [vmem:[%s5630_s5 + $0x28] sm:$0xff] }
 0x61e   :  { %v1206_v40 = vadd.f32 %v1200_v57, %v4289_v9  ;;  %v3831_v52 = vpack.c.bf16 %v154_v46, %v153_v45  ;;  %v3843_v57 = vpack.c.bf16 %v160_v23, %v159_v41 }
 0x61f   :  { %v1205_v34 = vadd.f32 %v1195_v35, %v4280_v8 }
 0x620   :  { %v1216_v7 = vsel %vm171_vm0, %v1206_v40, 0.0  ;;  %3832 = vmatprep.subr.bf16.mxu0 %v3831_v52 }
 0x621   :  { %v1213_v11 = vsel %vm171_vm0, %v1205_v34, 0.0  ;;  %3834 = vmatpush3.bf16.msra.mxu0 %v3831_v52 }
 0x622   :  { %1214 = vadd.xlane.f32.xlu1 %v1213_v11 }
 0x626   :  { %1217 = vadd.xlane.f32.xlu1 %v1216_v7 }
 0x6a6   :  { %v1212_v59 = vpop.xlane.xlu1 %1211 }
 0x6a7   :  { %v1221_v5 = vmul.f32 0.03125, %v1212_v59 }
 0x6a9   :  { %v4926_v60 = vsub.f32 %v1204_v55, %v1221_v5  ;;  %v157_v55 = vld [vmem:[%s5630_s5 + $0x10] sm:$0xff] }
 0x6aa   :  { %v1209_v62 = vpop.xlane.xlu1 %1208 }
 0x6ab   :  { %v1220_v15 = vmul.f32 0.03125, %v1209_v62  ;;  %v1229_v20 = vmul.f32 %v4926_v60, %v4926_v60 }
 0x6ad   :  { %v4930_v42 = vsub.f32 %v1203_v1, %v1220_v15  ;;  %v1235_v8 = vsel %vm171_vm0, %v1229_v20, 0.0  ;;  %v158_v1 = vld [vmem:[%s5630_s5 + $0x18] sm:$0xff]  ;;  %v1262_v20 = vsub.s32 1, %v4907_v29 }
 0x6ae   :  { %1236 = vadd.xlane.f32.xlu1 %v1235_v8  ;;  %v3839_v12 = vpack.c.bf16 %v158_v1, %v157_v55 }
 0x6af   :  { %v1215_v47 = vpop.xlane.xlu1 %1214  ;;  %v1228_v9 = vmul.f32 %v4930_v42, %v4930_v42 }
 0x6b0   :  { %v1222_v49 = vmul.f32 0.03125, %v1215_v47  ;;  %3840 = vmatprep.subr.bf16.mxu1 %v3839_v12 }
 0x6b1   :  { %v1232_v54 = vsel %vm171_vm0, %v1228_v9, 0.0  ;;  %3842 = vmatpush3.bf16.msra.mxu1 %v3839_v12 }
 0x6b2   :  { %v4936_v56 = vsub.f32 %v1205_v34, %v1222_v49  ;;  %1233 = vadd.xlane.f32.xlu1 %v1232_v54  ;;  %3844 = vmatprep.subr.bf16.mxu1 %v3843_v57  ;;  %v1263_v54 = vrot.slane %v4913_v2, %v1262_v20 }
 0x6b3   :  { %v1218_v61 = vpop.xlane.xlu1 %1217 }
 0x6b4   :  { %v1223_v24 = vmul.f32 0.03125, %v1218_v61  ;;  %v1230_v36 = vmul.f32 %v4936_v56, %v4936_v56 }
 0x6b5   :  { %3846 = vmatpush3.bf16.msra.mxu1 %v3843_v57 }
 0x6b6   :  { %v4940_v33 = vsub.f32 %v1206_v40, %v1223_v24  ;;  %v1238_v25 = vsel %vm171_vm0, %v1230_v36, 0.0  ;;  %v1270_v24 = vsub.s32 2, %v4907_v29 }
 0x6b7   :  { %1239 = vadd.xlane.f32.xlu1 %v1238_v25 }
 0x6b8   :  { %v1231_v43 = vmul.f32 %v4940_v33, %v4940_v33 }
 0x6ba   :  { %v1241_v4 = vsel %vm171_vm0, %v1231_v43, 0.0 }
 0x6bb   :  { %1242 = vadd.xlane.f32.xlu1 %v1241_v4  ;;  %v1271_v4 = vrot.slane %v4913_v2, %v1270_v24 }
 0x73b   :  { %v1237_v35 = vpop.xlane.xlu1 %1236 }
 0x73c   :  { %v1245_v34 = vmul.f32 0.03125, %v1237_v35 }
 0x73e   :  { %v1249_v11 = vadd.f32 1e-05, %v1245_v34 }
 0x73f   :  { %v1234_v40 = vpop.xlane.xlu1 %1233 }
 0x740   :  { %4034 = vrsqrt.f32 %v1249_v11  ;;  %v1244_v7 = vmul.f32 0.03125, %v1234_v40 }
 0x742   :  { %v1248_v59 = vadd.f32 1e-05, %v1244_v7 }
 0x744   :  { %4036 = vrsqrt.f32 %v1248_v59  ;;  %v1240_v5 = vpop.xlane.xlu1 %1239 }
 0x745   :  { %v1246_v62 = vmul.f32 0.03125, %v1240_v5 }
 0x747   :  { %v1250_v15 = vadd.f32 1e-05, %v1246_v62 }
 0x748   :  { %v1243_v8 = vpop.xlane.xlu1 %1242 }
 0x749   :  { %4038 = vrsqrt.f32 %v1250_v15  ;;  %v1247_v47 = vmul.f32 0.03125, %v1243_v8  ;;  %v1385_v15 = vsub.s32 3, %v4907_v29 }
 0x74a   :  { %v4035_v9 = vpop.eup %4034 }
 0x74b   :  { %v1251_v49 = vadd.f32 1e-05, %v1247_v47  ;;  %v1257_v61 = vmul.f32 %v4035_v9, %v4926_v60  ;;  %v1386_v8 = vrot.slane %v4913_v2, %v1385_v15 }
 0x74d   :  { %4040 = vrsqrt.f32 %v1251_v49  ;;  %v1265_v43 = vmul.f32 %v1263_v54, %v1257_v61 }
 0x74e   :  { %v4037_v36 = vpop.eup %4036 }
 0x74f   :  { %v1256_v25 = vmul.f32 %v4037_v36, %v4930_v42  ;;  %v1273_v45 = vadd.f32 %v1271_v4, %v1265_v43 }
 0x751   :  { %v1264_v30 = vmul.f32 %v1263_v54, %v1256_v25 }
 0x753   :  { %v4039_v19 = vpop.eup %4038  ;;  %v1272_v14 = vadd.f32 %v1271_v4, %v1264_v30 }
 0x754   :  { %v1258_v46 = vmul.f32 %v4039_v19, %v4936_v56  ;;  %v162_v56 = vld [vmem:[%s5630_s5 + $0x38] sm:$0xff] }
 0x755   :  { %3561 = vmatprep.mubr.msk.f32.mxu0 %vm171_vm0, %v1272_v14  ;;  %v3847_v1 = vpack.c.bf16 %v162_v56, %v161_v0 }
 0x756   :  { %3562 = vmatmul.mubr.msk.f32.vlgmr.msra.gmra.mrb[28].mxu0 %vm171_vm0, %v1273_v45  ;;  %v1266_v60 = vmul.f32 %v1263_v54, %v1258_v46 }
 0x757   :  { %v4041_v52 = vpop.eup %4040  ;;  %3848 = vmatprep.subr.bf16.mxu1 %v3847_v1 }
 0x758   :  { %v1274_v53 = vadd.f32 %v1271_v4, %v1266_v60  ;;  %v1259_v42 = vmul.f32 %v4041_v52, %v4940_v33  ;;  %3850 = vmatpush3.bf16.msra.mxu1 %v3847_v1  ;;  %v3046_v33 = vld [vmem:[%s5631_s7] ss:$0 sm:$0xff] }
 0x75a   :  { %3564 = vmatprep.mubr.msk.f32.mxu0 %vm171_vm0, %v1274_v53  ;;  %v1267_v3 = vmul.f32 %v1263_v54, %v1259_v42 }
 0x75c   :  { %v1275_v55 = vadd.f32 %v1271_v4, %v1267_v3 }
 0x75e   :  { %3565 = vmatmul.mubr.msk.f32.gmra.mrb[30].mxu0 %vm171_vm0, %v1275_v55 }
 0x829   :  { %v3563_v12 = vpop.f32.mrb[28].mxu0 }
 0x82a   :  { %v1366_v41 = vadd.f32 %v3563_v12, %v3046_v33  ;;  %v1360_v23 = vpop.f32.mrb[29].mxu0 }
 0x82b   :  { %v1361_v57 = vadd.f32 %v3046_v33, %v1360_v23 }
 0x82c   :  { %v1380_v34 = vmax.f32 %v1366_v41, 0.0 }
 0x82d   :  { %v1379_v35 = vmax.f32 %v1361_v57, 0.0 }
 0x82f   :  { %3583 = vmatprep.mubr.msk.f32.mxu1 %vm1387_vm1, %v1379_v35 }
 0x830   :  { %3584 = vmatmul.mubr.msk.f32.vlgmr.msra.gmra.mrb[44].mxu1 %vm1387_vm1, %v1380_v34 }
 0x831   :  { %v3566_v11 = vpop.f32.mrb[30].mxu0 }
 0x832   :  { %v1376_v40 = vadd.f32 %v3566_v11, %v3046_v33  ;;  %v1370_v7 = vpop.f32.mrb[31].mxu0 }
 0x833   :  { %v1371_v59 = vadd.f32 %v3046_v33, %v1370_v7 }
 0x834   :  { %v1382_v62 = vmax.f32 %v1376_v40, 0.0 }
 0x835   :  { %v1381_v5 = vmax.f32 %v1371_v59, 0.0 }
 0x837   :  { %3586 = vmatprep.mubr.msk.f32.mxu1 %vm1387_vm1, %v1381_v5 }
 0x838   :  { %3587 = vmatmul.mubr.msk.f32.gmra.mrb[46].mxu1 %vm1387_vm1, %v1382_v62 }
 0x839   :  { %1919 = vmatprep.mubr.f32.mxu1 %v4171_v31 }
 0x903   :  { %v3585_v47 = vpop.f32.mrb[44].mxu1 }
 0x904   :  { %v1472_v9 = vadd.f32 %v3585_v47, %v1386_v8  ;;  %v1466_v49 = vpop.f32.mrb[45].mxu1  ;;  %v3056_v47 = vld [vmem:[%s5619_s1 + $0x28] sm:$0xff] }
 0x905   :  { %v1467_v54 = vadd.f32 %v1466_v49, %v1386_v8  ;;  %v3057_v49 = vld [vmem:[%s5619_s1 + $0x30] sm:$0xff] }
 0x906   :  { %v1486_v61 = vadd.f32 %v1472_v9, %v1273_v45 }
 0x907   :  { %v1485_v36 = vadd.f32 %v1467_v54, %v1272_v14  ;;  %v3058_v54 = vld [vmem:[%s5619_s1 + $0x38] sm:$0xff] }
 0x908   :  { %v1492_v25 = vsel %vm171_vm0, %v1486_v61, 0.0 }
 0x909   :  { %1493 = vadd.xlane.f32.xlu0 %v1492_v25  ;;  %v1489_v43 = vsel %vm171_vm0, %v1485_v36, 0.0 }
 0x90a   :  { %1490 = vadd.xlane.f32.xlu1 %v1489_v43 }
 0x90b   :  { %v3588_v4 = vpop.f32.mrb[46].mxu1 }
 0x90c   :  { %v1482_v30 = vadd.f32 %v3588_v4, %v1386_v8  ;;  %v1476_v19 = vpop.f32.mrb[47].mxu1 }
 0x90d   :  { %v1477_v46 = vadd.f32 %v1476_v19, %v1386_v8  ;;  %v3055_v8 = vld [vmem:[%s5619_s1 + $0x20] sm:$0xff] }
 0x90e   :  { %v1488_v60 = vadd.f32 %v1482_v30, %v1275_v55  ;;  %v3851_v9 = vpack.c.bf16 %v3056_v47, %v3055_v8 }
 0x90f   :  { %v1487_v52 = vadd.f32 %v1477_v46, %v1274_v53 }
 0x910   :  { %v1498_v42 = vsel %vm171_vm0, %v1488_v60, 0.0  ;;  %3852 = vmatprep.subr.bf16.mxu0 %v3851_v9 }
 0x911   :  { %1499 = vadd.xlane.f32.xlu0 %v1498_v42  ;;  %v1495_v3 = vsel %vm171_vm0, %v1487_v52, 0.0  ;;  %3854 = vmatpush3.bf16.msra.mxu0 %v3851_v9  ;;  %v1543_v42 = vsub.s32 4, %v4907_v29 }
 0x912   :  { %1496 = vadd.xlane.f32.xlu1 %v1495_v3 }
 0x996   :  { %v1494_v45 = vpop.xlane.xlu0 %1493 }
 0x997   :  { %v1502_v14 = vmul.f32 0.03125, %v1494_v45  ;;  %v1491_v0 = vpop.xlane.xlu1 %1490 }
 0x998   :  { %v1501_v56 = vmul.f32 0.03125, %v1491_v0  ;;  %v5635_v0 = vsub.s32 5, %v4907_v29 }
 0x999   :  { %v1506_v1 = vsub.f32 %v1486_v61, %v1502_v14  ;;  %v3855_v61 = vpack.c.bf16 %v3058_v54, %v3057_v49 }
 0x99a   :  { %v1505_v33 = vsub.f32 %v1485_v36, %v1501_v56 }
 0x99b   :  { %v1510_v12 = vmul.f32 %v1506_v1, %v1506_v1  ;;  %3856 = vmatprep.subr.bf16.mxu0 %v3855_v61 }
 0x99c   :  { %v1509_v41 = vmul.f32 %v1505_v33, %v1505_v33  ;;  %3858 = vmatpush3.bf16.msra.mxu0 %v3855_v61 }
 0x99d   :  { %v1516_v23 = vsel %vm171_vm0, %v1510_v12, 0.0  ;;  %3860 = vmatprep.subr.bf16.mxu0 %v4302_v13  ;;  %v1544_v13 = vrot.slane %v4913_v2, %v1543_v42 }
 0x99e   :  { %1517 = vadd.xlane.f32.xlu0 %v1516_v23  ;;  %v1500_v57 = vpop.xlane.xlu0 %1499  ;;  %v1513_v53 = vsel %vm171_vm0, %v1509_v41, 0.0 }
 0x99f   :  { %v1504_v55 = vmul.f32 0.03125, %v1500_v57  ;;  %1514 = vadd.xlane.f32.xlu1 %v1513_v53  ;;  %v1497_v35 = vpop.xlane.xlu1 %1496  ;;  %v1552_v57 = vrot.slane %v4913_v2, %v5635_v0 }
 0x9a0   :  { %v1503_v34 = vmul.f32 0.03125, %v1497_v35 }
 0x9a1   :  { %v1508_v11 = vsub.f32 %v1488_v60, %v1504_v55 }
 0x9a2   :  { %v1507_v40 = vsub.f32 %v1487_v52, %v1503_v34 }
 0x9a3   :  { %v1512_v7 = vmul.f32 %v1508_v11, %v1508_v11 }
 0x9a4   :  { %v1511_v59 = vmul.f32 %v1507_v40, %v1507_v40 }
 0x9a5   :  { %v1522_v5 = vsel %vm171_vm0, %v1512_v7, 0.0 }
 0x9a6   :  { %1523 = vadd.xlane.f32.xlu0 %v1522_v5  ;;  %v1519_v62 = vsel %vm171_vm0, %v1511_v59, 0.0 }
 0x9a7   :  { %1520 = vadd.xlane.f32.xlu1 %v1519_v62 }
 0xa2b   :  { %v1518_v36 = vpop.xlane.xlu0 %1517 }
 0xa2c   :  { %v1526_v25 = vmul.f32 0.03125, %v1518_v36  ;;  %v1515_v43 = vpop.xlane.xlu1 %1514 }
 0xa2d   :  { %v1525_v4 = vmul.f32 0.03125, %v1515_v43 }
 0xa2e   :  { %v1530_v30 = vadd.f32 1e-05, %v1526_v25 }
 0xa2f   :  { %v1529_v19 = vadd.f32 1e-05, %v1525_v4 }
 0xa30   :  { %4042 = vrsqrt.f32 %v1530_v30 }
 0xa31   :  { %4044 = vrsqrt.f32 %v1529_v19 }
 0xa33   :  { %v1524_v46 = vpop.xlane.xlu0 %1523 }
 0xa34   :  { %v1528_v60 = vmul.f32 0.03125, %v1524_v46  ;;  %v1521_v52 = vpop.xlane.xlu1 %1520 }
 0xa35   :  { %v1527_v3 = vmul.f32 0.03125, %v1521_v52 }
 0xa36   :  { %v1532_v45 = vadd.f32 1e-05, %v1528_v60 }
 0xa37   :  { %v1531_v14 = vadd.f32 1e-05, %v1527_v3 }
 0xa38   :  { %4046 = vrsqrt.f32 %v1532_v45 }
 0xa39   :  { %4048 = vrsqrt.f32 %v1531_v14 }
 0xa3a   :  { %v4043_v56 = vpop.eup %4042 }
 0xa3b   :  { %v4045_v12 = vpop.eup %4044  ;;  %v1538_v41 = vmul.f32 %v4043_v56, %v1506_v1 }
 0xa3c   :  { %v1537_v23 = vmul.f32 %v4045_v12, %v1505_v33 }
 0xa3d   :  { %v1546_v53 = vmul.f32 %v1544_v13, %v1538_v41 }
 0xa3e   :  { %v1545_v55 = vmul.f32 %v1544_v13, %v1537_v23 }
 0xa3f   :  { %v5041_v34 = vadd.f32 %v1552_v57, %v1546_v53  ;;  %v4091_v53 = vld [vmem:[%s5623_s11 + $0x8] sm:$0xff] }
 0xa40   :  { %v5039_v35 = vadd.f32 %v1552_v57, %v1545_v55  ;;  %v4092_v55 = vld [vmem:[%s5623_s11 + $0x10] sm:$0xff] }
 0xa42   :  { %v4047_v7 = vpop.eup %4046  ;;  %3597 = vmatprep.mubr.msk.f32.mxu0 %vm171_vm0, %v5039_v35 }
 0xa43   :  { %v4049_v59 = vpop.eup %4048  ;;  %3598 = vmatmul.mubr.msk.f32.vlgmr.msra.gmra.mrb[32].mxu0 %vm171_vm0, %v5041_v34  ;;  %v1540_v1 = vmul.f32 %v4047_v7, %v1508_v11  ;;  %v4093_v7 = vld [vmem:[%s5623_s11 + $0x18] sm:$0xff] }
 0xa44   :  { %v1539_v33 = vmul.f32 %v4049_v59, %v1507_v40  ;;  %3862 = vmatpush1.bf16.msra.mxu0 %v4310_v17  ;;  %v3078_v17 = vld [vmem:[%s5621_s2 + $0x1] ss:$0 sm:$0xff] }
 0xa45   :  { %v1548_v5 = vmul.f32 %v1544_v13, %v1540_v1  ;;  %3864 = vmatprep.subr.bf16.mxu0 %v4322_v22  ;;  %v4094_v59 = vld [vmem:[%s5623_s11 + $0x20] sm:$0xff]  ;;  %v4095_v1 = vld [vmem:[%s5623_s11 + $0x28] sm:$0xff] }
 0xa46   :  { %v1547_v2 = vmul.f32 %v1544_v13, %v1539_v33  ;;  %v4096_v33 = vld [vmem:[%s5623_s11 + $0x30] sm:$0xff] }
 0xa47   :  { %v5052_v8 = vadd.f32 %v1552_v57, %v1548_v5  ;;  %v4097_v5 = vld [vmem:[%s5623_s11 + $0x38] sm:$0xff] }
 0xa48   :  { %v5049_v62 = vadd.f32 %v1552_v57, %v1547_v2  ;;  %3866 = vmatpush1.bf16.msra.mxu0 %v4332_v26  ;;  %v4090_v57 = vld [vmem:[%s5623_s11] sm:$0xff] }
 0xa49   :  { %v4098_v2 = vld [vmem:[%s5623_s11 + $0x40] sm:$0xff] }
 0xa4a   :  { %3600 = vmatprep.mubr.msk.f32.mxu0 %vm171_vm0, %v5049_v62 }
 0xa4b   :  { %3601 = vmatmul.mubr.msk.f32.gmra.mrb[34].mxu0 %vm171_vm0, %v5052_v8 }
 0xa4c   :  { %1814 = vmatprep.mubr.f32.mxu0 %v4171_v31 }
 0xb16   :  { %v3599_v22 = vpop.f32.mrb[32].mxu0 }
 0xb17   :  { %v5062_v11 = vadd.f32 %v3599_v22, %v3078_v17  ;;  %v1671_v40 = vpop.f32.mrb[33].mxu0  ;;  %v4100_v22 = vld [vmem:[%s5623_s11 + $0x50] sm:$0xff] }
 0xb18   :  { %v5064_v47 = vadd.f32 %v3078_v17, %v1671_v40  ;;  %v4101_v40 = vld [vmem:[%s5623_s11 + $0x58] sm:$0xff] }
 0xb19   :  { %1696 = vrot.lane.b32.xlu0 %v5062_v11, %s4170_s21 }
 0xb1a   :  { %1694 = vrot.lane.b32.xlu1 %v5064_v47, %s4170_s21  ;;  %v4000_v61 = vpack.i.bf16 %v5062_v11, %v5064_v47 }
 0xb1e   :  { %v3602_v26 = vpop.f32.mrb[34].mxu0 }
 0xb1f   :  { %v1681_v9 = vpop.f32.mrb[35].mxu0  ;;  %v5074_v54 = vadd.f32 %v3602_v26, %v3078_v17  ;;  %v4102_v26 = vld [vmem:[%s5623_s11 + $0x60] sm:$0xff] }
 0xb20   :  { %v5070_v49 = vadd.f32 %v3078_v17, %v1681_v9  ;;  %v4099_v17 = vld [vmem:[%s5623_s11 + $0x48] sm:$0xff] }
 0xb21   :  { %v4103_v9 = vld [vmem:[%s5623_s11 + $0x68] sm:$0xff] }
 0xb22   :  { %1698 = vrot.lane.b32.xlu1 %v5070_v49, %s4170_s21  ;;  %v4005_v36 = vpack.i.bf16 %v5074_v54, %v5070_v49 }
 0xb26   :  { %1700 = vrot.lane.b32.xlu1 %v5074_v54, %s4170_s21 }
 0xb2a   :  { %4001 = vrot.lane.b32.xlu1 %v4000_v61, %s4172_s10  ;;  %v4104_v61 = vld [vmem:[%s5623_s11 + $0x70] sm:$0xff] }
 0xb2e   :  { %4006 = vrot.lane.b32.xlu1 %v4005_v36, %s4172_s10  ;;  %v4105_v36 = vld [vmem:[%s5623_s11 + $0x78] sm:$0xff] }
 0xb8b   :  { %v1697_v43 = vpop.permute.xlu0 %1696 }
 0xb8c   :  { %v1695_v25 = vpop.permute.xlu1 %1694 }
 0xb8d   :  { %1706 = vxpose.xlu0.b32.start [1/4] (short) (narrow) %v1695_v25, 32  ;;  %v4106_v25 = vld [vmem:[%s5623_s11 + $0x80] sm:$0xff] }
 0xb91   :  { %1707 = vxpose.xlu0.b32.cont [2/4] (short) (narrow) %v1697_v43, 32  ;;  %v4107_v43 = vld [vmem:[%s5623_s11 + $0x88] sm:$0xff] }
 0xb94   :  { %v1699_v4 = vpop.permute.xlu1 %1698 }
 0xb95   :  { %1708 = vxpose.xlu0.b32.cont [3/4] (short) (narrow) %v1699_v4, 32  ;;  %v4108_v4 = vld [vmem:[%s5623_s11 + $0x90] sm:$0xff] }
 0xb98   :  { %v1701_v30 = vpop.permute.xlu1 %1700 }
 0xb99   :  { %1709 = vxpose.xlu0.b32.end [4/4] (short) (narrow) %v1701_v30, 32  ;;  %v4109_v30 = vld [vmem:[%s5623_s11 + $0x98] sm:$0xff] }
 0xb9c   :  { %v4002_v19 = vpop.permute.xlu1 %4001 }
 0xb9d   :  { %v4004_v46 = vunpack.i.h.bf16 %v4002_v19  ;;  %v4003_v60 = vunpack.i.l.bf16 %v4002_v19  ;;  %v4110_v19 = vld [vmem:[%s5623_s11 + $0xa0] sm:$0xff] }
 0xb9f   :  { %v3875_v52 = vpack.c.bf16 %v4004_v46, %v4003_v60  ;;  %v4111_v46 = vld [vmem:[%s5623_s11 + $0xa8] sm:$0xff]  ;;  %v4112_v60 = vld [vmem:[%s5623_s11 + $0xb0] sm:$0xff] }
 0xba0   :  { %v4007_v3 = vpop.permute.xlu1 %4006 }
 0xba1   :  { %3876 = vmatprep.subr.bf16.mxu0 %v3875_v52  ;;  %v4009_v45 = vunpack.i.h.bf16 %v4007_v3  ;;  %v4008_v14 = vunpack.i.l.bf16 %v4007_v3  ;;  %v4114_v3 = vld [vmem:[%s5623_s11 + $0xc0] sm:$0xff] }
 0xba3   :  { %v3879_v56 = vpack.c.bf16 %v4009_v45, %v4008_v14  ;;  %v4115_v45 = vld [vmem:[%s5623_s11 + $0xc8] sm:$0xff]  ;;  %v4116_v14 = vld [vmem:[%s5623_s11 + $0xd0] sm:$0xff] }
 0xc0d   :  { %v1722_v13 = vpop.trf.xlu0 }
 0xc0e   :  { %3083 = vmatmul.mubr.msk.f32.vlgmr.msra.gmra.mrb[36].mxu0 %vm171_vm0, %v1722_v13  ;;  %v4117_v13 = vld [vmem:[%s5623_s11 + $0xd8] sm:$0xff] }
 0xc0f   :  { %3878 = vmatpush3.bf16.msra.mxu0 %v3875_v52  ;;  %1820 = vmatprep.mubr.f32.mxu0 %v4171_v31  ;;  %v4113_v52 = vld [vmem:[%s5623_s11 + $0xb8] sm:$0xff] }
 0xc10   :  { %3880 = vmatprep.subr.bf16.mxu0 %v3879_v56 }
 0xc11   :  { %v1723_v12 = vpop.trf.xlu0 }
 0xc12   :  { %3084 = vmatmul.mubr.msk.f32.gmra.mrb[38].mxu0 %vm171_vm0, %v1723_v12  ;;  %v4119_v12 = vld [vmem:[%s5623_s11 + $0xe8] sm:$0xff] }
 0xc13   :  { %3882 = vmatpush3.bf16.msra.mxu0 %v3879_v56  ;;  %1826 = vmatprep.mubr.f32.mxu0 %v4171_v31  ;;  %v4118_v56 = vld [vmem:[%s5623_s11 + $0xe0] sm:$0xff] }
 0xc15   :  { %v1724_v41 = vpop.trf.xlu0 }
 0xc16   :  { %3085 = vmatmul.mubr.msk.f32.gmra.mrb[40].mxu0 %vm171_vm0, %v1724_v41  ;;  %v4120_v41 = vld [vmem:[%s5623_s11 + $0xf0] sm:$0xff] }
 0xc17   :  { %1832 = vmatprep.mubr.f32.mxu0 %v4171_v31 }
 0xc19   :  { %v1725_v23 = vpop.trf.xlu0 }
 0xc1a   :  { %3086 = vmatmul.mubr.msk.f32.gmra.mrb[42].mxu0 %vm171_vm0, %v1725_v23  ;;  %v4121_v23 = vld [vmem:[%s5623_s11 + $0xf8] sm:$0xff] }
 0xc1b   :  { %3611 = vmatprep.mubr.msk.f32.mxu0 %vm171_vm0, %v4090_v57 }
 0xc1e   :  { %3612 = vmatmul.mubr.msk.f32.vlgmr.msra.gmra.mrb[44].mxu0 %vm171_vm0, %v4091_v53 }
 0xc1f   :  { %3614 = vmatprep.mubr.msk.f32.mxu0 %vm171_vm0, %v4092_v55 }
 0xc22   :  { %3615 = vmatmul.mubr.msk.f32.gmra.mrb[46].mxu0 %vm171_vm0, %v4093_v7  ;;  %v4122_v7 = vld [vmem:[%s5624_s12] sm:$0xff] }
 0xc23   :  { %3617 = vmatprep.mubr.msk.f32.mxu0 %vm171_vm0, %v4094_v59 }
 0xc26   :  { %3618 = vmatmul.mubr.msk.f32.gmra.mrb[48].mxu0 %vm171_vm0, %v4095_v1  ;;  %v4123_v1 = vld [vmem:[%s5624_s12 + $0x10] sm:$0xff] }
 0xc27   :  { %3620 = vmatprep.mubr.msk.f32.mxu0 %vm171_vm0, %v4096_v33 }
 0xc2a   :  { %3621 = vmatmul.mubr.msk.f32.gmra.mrb[50].mxu0 %vm171_vm0, %v4097_v5 }
 0xc2b   :  { %3623 = vmatprep.mubr.msk.f32.mxu0 %vm171_vm0, %v4098_v2  ;;  %v4124_v2 = vld [vmem:[%s5624_s12 + $0x8] sm:$0xff] }
 0xc2e   :  { %3624 = vmatmul.mubr.msk.f32.gmra.mrb[52].mxu0 %vm171_vm0, %v4099_v17 }
 0xc2f   :  { %3626 = vmatprep.mubr.msk.f32.mxu0 %vm171_vm0, %v4100_v22  ;;  %v4125_v22 = vld [vmem:[%s5624_s12 + $0x18] sm:$0xff] }
 0xc32   :  { %3627 = vmatmul.mubr.msk.f32.gmra.mrb[54].mxu0 %vm171_vm0, %v4101_v40 }
 0xc33   :  { %3629 = vmatprep.mubr.msk.f32.mxu0 %vm171_vm0, %v4102_v26 }
 0xc36   :  { %3630 = vmatmul.mubr.msk.f32.gmra.mrb[56].mxu0 %vm171_vm0, %v4103_v9 }
 0xc37   :  { %3632 = vmatprep.mubr.msk.f32.mxu0 %vm171_vm0, %v4104_v61 }
 0xc3a   :  { %3633 = vmatmul.mubr.msk.f32.gmra.mrb[58].mxu0 %vm171_vm0, %v4105_v36 }
 0xc3b   :  { %3635 = vmatprep.mubr.msk.f32.mxu0 %vm171_vm0, %v4106_v25 }
 0xc3e   :  { %3636 = vmatmul.mubr.msk.f32.gmra.mrb[60].mxu0 %vm171_vm0, %v4107_v43  ;;  %v4126_v43 = vld [vmem:[%s5624_s12 + $0x20] sm:$0xff] }
 0xc3f   :  { %3638 = vmatprep.mubr.msk.f32.mxu0 %vm171_vm0, %v4108_v4 }
 0xc42   :  { %3639 = vmatmul.mubr.msk.f32.gmra.mrb[62].mxu0 %vm171_vm0, %v4109_v30  ;;  %v4127_v30 = vld [vmem:[%s5624_s12 + $0x30] sm:$0xff] }
 0xc43   :  { %3641 = vmatprep.mubr.msk.f32.mxu0 %vm171_vm0, %v4110_v19 }
 0xc46   :  { %3642 = vmatmul.mubr.msk.f32.gmra.mrb[64].mxu0 %vm171_vm0, %v4111_v46 }
 0xc47   :  { %3644 = vmatprep.mubr.msk.f32.mxu0 %vm171_vm0, %v4112_v60  ;;  %v4128_v60 = vld [vmem:[%s5624_s12 + $0x28] sm:$0xff] }
 0xc4a   :  { %3645 = vmatmul.mubr.msk.f32.gmra.mrb[66].mxu0 %vm171_vm0, %v4113_v52 }
 0xc4b   :  { %3647 = vmatprep.mubr.msk.f32.mxu0 %vm171_vm0, %v4114_v3  ;;  %v4129_v3 = vld [vmem:[%s5624_s12 + $0x38] sm:$0xff] }
 0xc4e   :  { %3648 = vmatmul.mubr.msk.f32.gmra.mrb[68].mxu0 %vm171_vm0, %v4115_v45 }
 0xc4f   :  { %3650 = vmatprep.mubr.msk.f32.mxu0 %vm171_vm0, %v4116_v14 }
 0xc52   :  { %3651 = vmatmul.mubr.msk.f32.gmra.mrb[70].mxu0 %vm171_vm0, %v4117_v13 }
 0xc53   :  { %3653 = vmatprep.mubr.msk.f32.mxu0 %vm171_vm0, %v4118_v56 }
 0xc56   :  { %3654 = vmatmul.mubr.msk.f32.gmra.mrb[72].mxu0 %vm171_vm0, %v4119_v12 }
 0xc57   :  { %3656 = vmatprep.mubr.msk.f32.mxu0 %vm171_vm0, %v4120_v41 }
 0xc5a   :  { %3657 = vmatmul.mubr.msk.f32.gmra.mrb[74].mxu0 %vm171_vm0, %v4121_v23 }
 0xce1   :  { %v1816_v57 = vpop.f32.mrb[36].mxu0 }
 0xce2   :  { %v1818_v53 = vpop.f32.mrb[37].mxu0  ;;  %v1839_v59 = vmul.f32 %v4122_v7, %v1816_v57 }
 0xce3   :  { %v1840_v17 = vmul.f32 %v4124_v2, %v1818_v53 }
 0xce5   :  { %v1822_v55 = vpop.f32.mrb[38].mxu0 }
 0xce6   :  { %v1841_v33 = vmul.f32 %v4123_v1, %v1822_v55  ;;  %v1824_v5 = vpop.f32.mrb[39].mxu0  ;;  %v4133_v55 = vld [vmem:[%s5625_s13 + $0x10] sm:$0xff]  ;;  %v4134_v1 = vld [vmem:[%s5625_s13 + $0x28] sm:$0xff] }
 0xce7   :  { %v1842_v40 = vmul.f32 %v4125_v22, %v1824_v5 }
 0xce8   :  { %v3869_v26 = vpack.c.bf16 %v1841_v33, %v1839_v59 }
 0xce9   :  { %v3867_v9 = vpack.c.bf16 %v1842_v40, %v1840_v17  ;;  %v1828_v61 = vpop.f32.mrb[40].mxu0  ;;  %v4135_v17 = vld [vmem:[%s5625_s13 + $0x20] sm:$0xff] }
 0xcea   :  { %v1830_v36 = vpop.f32.mrb[41].mxu0  ;;  %v1843_v4 = vmul.f32 %v4126_v43, %v1828_v61 }
 0xceb   :  { %3868 = vmatprep.subr.bf16.mxu1 %v3867_v9  ;;  %v1844_v52 = vmul.f32 %v4128_v60, %v1830_v36 }
 0xcec   :  { %3870 = vmatpush1.bf16.msra.mxu1 %v3869_v26  ;;  %v4136_v26 = vld [vmem:[%s5625_s13 + $0x38] sm:$0xff] }
 0xced   :  { %v1834_v25 = vpop.f32.mrb[42].mxu0 }
 0xcee   :  { %v1845_v19 = vmul.f32 %v4127_v30, %v1834_v25  ;;  %v1836_v46 = vpop.f32.mrb[43].mxu0  ;;  %v4137_v25 = vld [vmem:[%s5625_s13 + $0x30] sm:$0xff]  ;;  %v4138_v30 = vld [vmem:[%s5625_s13 + $0x48] sm:$0xff] }
 0xcef   :  { %v1846_v45 = vmul.f32 %v4129_v3, %v1836_v46 }
 0xcf0   :  { %v3873_v14 = vpack.c.bf16 %v1845_v19, %v1843_v4 }
 0xcf1   :  { %v3871_v13 = vpack.c.bf16 %v1846_v45, %v1844_v52  ;;  %v3613_v56 = vpop.f32.mrb[44].mxu0  ;;  %v4139_v52 = vld [vmem:[%s5625_s13 + $0x40] sm:$0xff] }
 0xcf2   :  { %v2058_v41 = vpop.f32.mrb[45].mxu0 }
 0xcf3   :  { %3872 = vmatprep.subr.bf16.mxu1 %v3871_v13 }
 0xcf4   :  { %3874 = vmatpush1.bf16.msra.mxu1 %v3873_v14  ;;  %v4140_v14 = vld [vmem:[%s5625_s13 + $0x58] sm:$0xff] }
 0xcf7   :  { %3087 = vmatmul.mubr.msk.f32.vlgmr.msra.gmra.mrb[48].mxu1 %vm171_vm0, %v5064_v47  ;;  %v4130_v47 = vld [vmem:[%s5625_s13 + $0x8] sm:$0xff] }
 0xcf8   :  { %1925 = vmatprep.mubr.f32.mxu1 %v4171_v31  ;;  %v5257_v12 = vmul.f32 %v4130_v47, %v3613_v56 }
 0xcfb   :  { %3088 = vmatmul.mubr.msk.f32.gmra.mrb[50].mxu1 %vm171_vm0, %v5062_v11  ;;  %v4131_v11 = vld [vmem:[%s5625_s13] sm:$0xff] }
 0xcfc   :  { %1931 = vmatprep.mubr.f32.mxu1 %v4171_v31  ;;  %v5262_v23 = vmul.f32 %v4131_v11, %v2058_v41  ;;  %v4141_v41 = vld [vmem:[%s5625_s13 + $0x50] sm:$0xff] }
 0xcfe   :  { %v3885_v53 = vpack.c.bf16 %v5257_v12, %v5262_v23 }
 0xcff   :  { %3089 = vmatmul.mubr.msk.f32.gmra.mrb[52].mxu1 %vm171_vm0, %v5070_v49  ;;  %v3616_v49 = vpop.f32.mrb[46].mxu0 }
 0xd00   :  { %1937 = vmatprep.mubr.f32.mxu1 %v4171_v31  ;;  %v4132_v31 = vld [vmem:[%s5625_s13 + $0x18] sm:$0xff]  ;;  %v2068_v57 = vpop.f32.mrb[47].mxu0 }
 0xd01   :  { %v5274_v7 = vmul.f32 %v4133_v55, %v2068_v57  ;;  %v3619_v59 = vpop.f32.mrb[48].mxu0 }
 0xd02   :  { %v5279_v33 = vmul.f32 %v4134_v1, %v3619_v59  ;;  %v2078_v5 = vpop.f32.mrb[49].mxu0  ;;  %v4143_v1 = vld [vmem:[%s5625_s13 + $0x60] sm:$0xff] }
 0xd03   :  { %3090 = vmatmul.mubr.msk.f32.gmra.mrb[54].mxu1 %vm171_vm0, %v5074_v54  ;;  %v5267_v54 = vmul.f32 %v4132_v31, %v3616_v49  ;;  %v5286_v22 = vmul.f32 %v4135_v17, %v2078_v5  ;;  %v3622_v40 = vpop.f32.mrb[50].mxu0  ;;  %v4142_v31 = vld [vmem:[%s5625_s13 + $0x68] sm:$0xff] }
 0xd04   :  { %v5291_v9 = vmul.f32 %v4136_v26, %v3622_v40  ;;  %v2088_v61 = vpop.f32.mrb[51].mxu0  ;;  %v4144_v40 = vld [vmem:[%s5625_s13 + $0x78] sm:$0xff] }
 0xd05   :  { %v3889_v2 = vpack.c.bf16 %v5267_v54, %v5274_v7  ;;  %v3893_v36 = vpack.c.bf16 %v5279_v33, %v5286_v22  ;;  %v5298_v43 = vmul.f32 %v4137_v25, %v2088_v61  ;;  %v3625_v4 = vpop.f32.mrb[52].mxu0  ;;  %v4162_v22 = vld [vmem:[%s5626_s14] sm:$0xff] }
 0xd06   :  { %v5303_v19 = vmul.f32 %v4138_v30, %v3625_v4  ;;  %v2098_v46 = vpop.f32.mrb[53].mxu0  ;;  %v4145_v4 = vld [vmem:[%s5625_s13 + $0x70] sm:$0xff] }
 0xd07   :  { %v3897_v60 = vpack.c.bf16 %v5291_v9, %v5298_v43  ;;  %v5310_v3 = vmul.f32 %v4139_v52, %v2098_v46  ;;  %v3628_v45 = vpop.f32.mrb[54].mxu0  ;;  %v4146_v52 = vld [vmem:[%s5625_s13 + $0x88] sm:$0xff] }
 0xd08   :  { %v5315_v13 = vmul.f32 %v4140_v14, %v3628_v45  ;;  %v2108_v56 = vpop.f32.mrb[55].mxu0  ;;  %v4163_v43 = vld [vmem:[%s5626_s14 + $0x8] sm:$0xff] }
 0xd09   :  { %v3901_v47 = vpack.c.bf16 %v5303_v19, %v5310_v3  ;;  %v5322_v11 = vmul.f32 %v4141_v41, %v2108_v56  ;;  %v3631_v49 = vpop.f32.mrb[56].mxu0  ;;  %v4147_v41 = vld [vmem:[%s5625_s13 + $0x80] sm:$0xff] }
 0xd0a   :  { %v5327_v57 = vmul.f32 %v4142_v31, %v3631_v49  ;;  %v2118_v55 = vpop.f32.mrb[57].mxu0 }
 0xd0b   :  { %v3905_v59 = vpack.c.bf16 %v5315_v13, %v5322_v11  ;;  %v5334_v5 = vmul.f32 %v4143_v1, %v2118_v55  ;;  %v4148_v55 = vld [vmem:[%s5625_s13 + $0x98] sm:$0xff]  ;;  %v4164_v13 = vld [vmem:[%s5626_s14 + $0x10] sm:$0xff] }
 0xd0c   :  { %v4165_v11 = vld [vmem:[%s5626_s14 + $0x18] sm:$0xff] }
 0xd0d   :  { %v3634_v17 = vpop.f32.mrb[58].mxu0  ;;  %v3909_v25 = vpack.c.bf16 %v5327_v57, %v5334_v5 }
 0xd0e   :  { %v5339_v26 = vmul.f32 %v4144_v40, %v3634_v17  ;;  %v2128_v61 = vpop.f32.mrb[59].mxu0 }
 0xd0f   :  { %v5346_v30 = vmul.f32 %v4145_v4, %v2128_v61  ;;  %v4149_v61 = vld [vmem:[%s5625_s13 + $0x90] sm:$0xff] }
 0xd11   :  { %v3637_v46 = vpop.f32.mrb[60].mxu0  ;;  %v3913_v56 = vpack.c.bf16 %v5339_v26, %v5346_v30  ;;  %v4166_v26 = vld [vmem:[%s5626_s14 + $0x20] sm:$0xff] }
 0xd12   :  { %v2234_v45 = vmul.f32 %v4146_v52, %v3637_v46  ;;  %v2138_v14 = vpop.f32.mrb[61].mxu0  ;;  %v4150_v52 = vld [vmem:[%s5625_s13 + $0xa8] sm:$0xff] }
 0xd13   :  { %v2233_v49 = vmul.f32 %v4147_v41, %v2138_v14 }
 0xd15   :  { %v3640_v31 = vpop.f32.mrb[62].mxu0  ;;  %v3883_v40 = vpack.c.bf16 %v2234_v45, %v2233_v49  ;;  %v4152_v49 = vld [vmem:[%s5625_s13 + $0xb8] sm:$0xff] }
 0xd16   :  { %v2236_v1 = vmul.f32 %v4148_v55, %v3640_v31  ;;  %v2148_v17 = vpop.f32.mrb[63].mxu0  ;;  %v4151_v31 = vld [vmem:[%s5625_s13 + $0xa0] sm:$0xff] }
 0xd17   :  { %v2235_v4 = vmul.f32 %v4149_v61, %v2148_v17  ;;  %3884 = vmatprep.subr.bf16.mxu1 %v3883_v40 }
 0xd18   :  { %3886 = vmatpush3.bf16.msra.mxu1 %v3885_v53 }
 0xd19   :  { %v3643_v46 = vpop.f32.mrb[64].mxu0  ;;  %v3887_v41 = vpack.c.bf16 %v2236_v1, %v2235_v4  ;;  %v4153_v1 = vld [vmem:[%s5625_s13 + $0xb0] sm:$0xff] }
 0xd1a   :  { %v2238_v0 = vmul.f32 %v4150_v52, %v3643_v46  ;;  %v2158_v14 = vpop.f32.mrb[65].mxu0  ;;  %v4154_v52 = vld [vmem:[%s5625_s13 + $0xc8] sm:$0xff] }
 0xd1b   :  { %v2237_v55 = vmul.f32 %v4151_v31, %v2158_v14  ;;  %3888 = vmatprep.subr.bf16.mxu1 %v3887_v41  ;;  %v4155_v14 = vld [vmem:[%s5625_s13 + $0xc0] sm:$0xff]  ;;  %v4156_v41 = vld [vmem:[%s5625_s13 + $0xd8] sm:$0xff] }
 0xd1c   :  { %3890 = vmatpush3.bf16.msra.mxu1 %v3889_v2 }
 0xd1d   :  { %v3646_v45 = vpop.f32.mrb[66].mxu0  ;;  %v3891_v46 = vpack.c.bf16 %v2238_v0, %v2237_v55 }
 0xd1e   :  { %v2240_v17 = vmul.f32 %v4152_v49, %v3646_v45  ;;  %v2168_v61 = vpop.f32.mrb[67].mxu0 }
 0xd1f   :  { %v2239_v40 = vmul.f32 %v4153_v1, %v2168_v61  ;;  %3892 = vmatprep.subr.bf16.mxu1 %v3891_v46 }
 0xd20   :  { %3894 = vmatpush3.bf16.msra.mxu1 %v3893_v36 }
 0xd21   :  { %v3649_v4 = vpop.f32.mrb[68].mxu0  ;;  %v3895_v53 = vpack.c.bf16 %v2240_v17, %v2239_v40  ;;  %v4157_v17 = vld [vmem:[%s5625_s13 + $0xd0] sm:$0xff]  ;;  %v4158_v40 = vld [vmem:[%s5625_s13 + $0xe8] sm:$0xff] }
 0xd22   :  { %v2242_v12 = vmul.f32 %v4154_v52, %v3649_v4  ;;  %v2178_v23 = vpop.f32.mrb[69].mxu0  ;;  %v4159_v4 = vld [vmem:[%s5625_s13 + $0xe0] sm:$0xff] }
 0xd23   :  { %v2241_v31 = vmul.f32 %v4155_v14, %v2178_v23  ;;  %3896 = vmatprep.subr.bf16.mxu1 %v3895_v53 }
 0xd24   :  { %3898 = vmatpush3.bf16.msra.mxu1 %v3897_v60 }
 0xd25   :  { %v3652_v0 = vpop.f32.mrb[70].mxu0  ;;  %v3899_v49 = vpack.c.bf16 %v2242_v12, %v2241_v31  ;;  %v4160_v12 = vld [vmem:[%s5625_s13 + $0xf8] sm:$0xff] }
 0xd26   :  { %v2244_v55 = vmul.f32 %v4156_v41, %v3652_v0  ;;  %v2188_v45 = vpop.f32.mrb[71].mxu0  ;;  %v4161_v0 = vld [vmem:[%s5625_s13 + $0xf0] sm:$0xff] }
 0xd27   :  { %v2243_v61 = vmul.f32 %v4157_v17, %v2188_v45  ;;  %3900 = vmatprep.subr.bf16.mxu1 %v3899_v49  ;;  %v4168_v17 = vld [vmem:[%s5626_s14 + $0x30] sm:$0xff] }
 0xd28   :  { %3902 = vmatpush3.bf16.msra.mxu1 %v3901_v47 }
 0xd29   :  { %v3655_v1 = vpop.f32.mrb[72].mxu0  ;;  %v3903_v2 = vpack.c.bf16 %v2244_v55, %v2243_v61 }
 0xd2a   :  { %v2246_v54 = vmul.f32 %v4158_v40, %v3655_v1  ;;  %v2198_v7 = vpop.f32.mrb[73].mxu0  ;;  %v4169_v40 = vld [vmem:[%s5626_s14 + $0x38] sm:$0xff] }
 0xd2b   :  { %v2245_v52 = vmul.f32 %v4159_v4, %v2198_v7  ;;  %3904 = vmatprep.subr.bf16.mxu1 %v3903_v2  ;;  %v3060_v2 = vld [vmem:[%s5627_s3 + $0x20] sm:$0xff]  ;;  %v3061_v4 = vld [vmem:[%s5627_s3 + $0x28] sm:$0xff] }
 0xd2c   :  { %3906 = vmatpush3.bf16.msra.mxu1 %v3905_v59 }
 0xd2d   :  { %v3658_v46 = vpop.f32.mrb[74].mxu0  ;;  %v3907_v31 = vpack.c.bf16 %v2246_v54, %v2245_v52  ;;  %v3947_v52 = vpack.c.bf16 %v3061_v4, %v3060_v2 }
 0xd2e   :  { %v2248_v23 = vmul.f32 %v4160_v12, %v3658_v46  ;;  %v2208_v14 = vpop.f32.mrb[75].mxu0 }
 0xd2f   :  { %v2247_v41 = vmul.f32 %v4161_v0, %v2208_v14  ;;  %3908 = vmatprep.subr.bf16.mxu1 %v3907_v31  ;;  %3948 = vmatprep.subr.bf16.mxu0 %v3947_v52 }
 0xd30   :  { %3910 = vmatpush3.bf16.msra.mxu1 %v3909_v25  ;;  %3950 = vmatpush3.bf16.msra.mxu0 %v3947_v52 }
 0xd31   :  { %v3911_v55 = vpack.c.bf16 %v2248_v23, %v2247_v41 }
 0xd33   :  { %3912 = vmatprep.subr.bf16.mxu1 %v3911_v55 }
 0xd34   :  { %3914 = vmatpush3.bf16.msra.mxu1 %v3913_v56  ;;  %v4167_v56 = vld [vmem:[%s5626_s14 + $0x28] sm:$0xff] }
 0xd35   :  { %3916 = vmatprep.subr.bf16.mxu1 %v4813_v51 }
 0xdca   :  { %v1921_v33 = vpop.f32.mrb[48].mxu1 }
 0xdcb   :  { %v1922_v9 = vadd.f32 %v4162_v22, %v1921_v33  ;;  %v1923_v36 = vpop.f32.mrb[49].mxu1 }
 0xdcc   :  { %v1924_v19 = vadd.f32 %v4163_v43, %v1923_v36 }
 0xdce   :  { %v1927_v60 = vpop.f32.mrb[50].mxu1  ;;  %v1944_v3 = vmax.f32 %v1922_v9, %v1924_v19 }
 0xdcf   :  { %v1928_v47 = vadd.f32 %v4164_v13, %v1927_v60  ;;  %v1929_v51 = vpop.f32.mrb[51].mxu1 }
 0xdd0   :  { %v1930_v57 = vadd.f32 %v4165_v11, %v1929_v51  ;;  %1945 = vmax.xlane.f32.xlu1 %v1944_v3 }
 0xdd2   :  { %v1933_v59 = vpop.f32.mrb[52].mxu1  ;;  %v1947_v5 = vmax.f32 %v1928_v47, %v1930_v57 }
 0xdd3   :  { %v1934_v25 = vadd.f32 %v4166_v26, %v1933_v59  ;;  %v1935_v30 = vpop.f32.mrb[53].mxu1 }
 0xdd4   :  { %v1936_v53 = vadd.f32 %v4167_v56, %v1935_v30  ;;  %1948 = vmax.xlane.f32.xlu0 %v1947_v5 }
 0xdd6   :  { %v1939_v45 = vpop.f32.mrb[54].mxu1  ;;  %v1950_v49 = vmax.f32 %v1934_v25, %v1936_v53 }
 0xdd7   :  { %v1940_v61 = vadd.f32 %v4168_v17, %v1939_v45  ;;  %v1941_v1 = vpop.f32.mrb[55].mxu1 }
 0xdd8   :  { %v1942_v54 = vadd.f32 %v4169_v40, %v1941_v1  ;;  %1951 = vmax.xlane.f32.xlu1 %v1950_v49 }
 0xdda   :  { %v1953_v7 = vmax.f32 %v1940_v61, %v1942_v54 }
 0xddc   :  { %1954 = vmax.xlane.f32.xlu1 %v1953_v7 }
 0xe5d   :  { %v1946_v46 = vpop.xlane.xlu1 %1945 }
 0xe5e   :  { %v1956_v12 = vsub.f32 %v1922_v9, %v1946_v46  ;;  %v1957_v23 = vsub.f32 %v1924_v19, %v1946_v46 }
 0xe60   :  { %v1964_v14 = vmul.f32 1.442695, %v1956_v12  ;;  %v1966_v31 = vmul.f32 1.442695, %v1957_v23 }
 0xe61   :  { %v1949_v0 = vpop.xlane.xlu0 %1948 }
 0xe62   :  { %4050 = vpow2.f32 %v1964_v14  ;;  %v1958_v41 = vsub.f32 %v1928_v47, %v1949_v0  ;;  %v1959_v55 = vsub.f32 %v1930_v57, %v1949_v0 }
 0xe63   :  { %4052 = vpow2.f32 %v1966_v31 }
 0xe64   :  { %v1968_v33 = vmul.f32 1.442695, %v1958_v41  ;;  %v1970_v22 = vmul.f32 1.442695, %v1959_v55 }
 0xe65   :  { %v1952_v36 = vpop.xlane.xlu1 %1951 }
 0xe66   :  { %4054 = vpow2.f32 %v1968_v33  ;;  %v1960_v43 = vsub.f32 %v1934_v25, %v1952_v36  ;;  %v1961_v60 = vsub.f32 %v1936_v53, %v1952_v36 }
 0xe67   :  { %4056 = vpow2.f32 %v1970_v22  ;;  %v5481_v22 = vld [vmem:[%s5628_s6 + $0x8] sm:$0xff] }
 0xe68   :  { %v1972_v3 = vmul.f32 1.442695, %v1960_v43  ;;  %v1974_v13 = vmul.f32 1.442695, %v1961_v60  ;;  %v2430_v36 = vrot.slane %v5481_v22, %v1104_v48 }
 0xe69   :  { %v1955_v51 = vpop.xlane.xlu1 %1954 }
 0xe6a   :  { %4058 = vpow2.f32 %v1972_v3  ;;  %v1962_v9 = vsub.f32 %v1940_v61, %v1955_v51  ;;  %v1963_v19 = vsub.f32 %v1942_v54, %v1955_v51 }
 0xe6b   :  { %4060 = vpow2.f32 %v1974_v13 }
 0xe6c   :  { %v4051_v11 = vpop.eup %4050  ;;  %v1976_v59 = vmul.f32 1.442695, %v1962_v9  ;;  %v1978_v5 = vmul.f32 1.442695, %v1963_v19 }
 0xe6d   :  { %v4053_v47 = vpop.eup %4052 }
 0xe6e   :  { %4062 = vpow2.f32 %v1976_v59  ;;  %2313 = vmatprep.mubr.f32.mxu1 %v4053_v47 }
 0xe6f   :  { %4064 = vpow2.f32 %v1978_v5  ;;  %2314 = vmatmul.mubr.f32.vlgmr.msra.gmra.mrb[56].mxu1 %v4051_v11 }
 0xe70   :  { %v4055_v57 = vpop.eup %4054  ;;  %3918 = vmatpush3.bf16.msra.mxu1 %v4824_v58  ;;  %v3062_v58 = vld [vmem:[%s5627_s3 + $0x30] sm:$0xff] }
 0xe71   :  { %v4057_v26 = vpop.eup %4056  ;;  %3920 = vmatprep.subr.bf16.mxu1 %v4828_v37  ;;  %v3063_v37 = vld [vmem:[%s5627_s3 + $0x38] sm:$0xff] }
 0xe72   :  { %2318 = vmatprep.mubr.f32.mxu1 %v4057_v26 }
 0xe73   :  { %2319 = vmatmul.mubr.f32.gmra.mrb[58].mxu1 %v4055_v57 }
 0xe74   :  { %v4059_v25 = vpop.eup %4058  ;;  %3922 = vmatpush3.bf16.msra.mxu1 %v4832_v44  ;;  %v3951_v44 = vpack.c.bf16 %v3063_v37, %v3062_v58 }
 0xe75   :  { %v4061_v30 = vpop.eup %4060  ;;  %3924 = vmatprep.subr.bf16.mxu1 %v4838_v28 }
 0xe76   :  { %2323 = vmatprep.mubr.f32.mxu1 %v4061_v30  ;;  %3952 = vmatprep.subr.bf16.mxu0 %v3951_v44 }
 0xe77   :  { %2324 = vmatmul.mubr.f32.gmra.mrb[60].mxu1 %v4059_v25  ;;  %3954 = vmatpush3.bf16.msra.mxu0 %v3951_v44 }
 0xe78   :  { %v4063_v56 = vpop.eup %4062  ;;  %3926 = vmatpush3.bf16.msra.mxu1 %v4842_v21 }
 0xe79   :  { %v4065_v53 = vpop.eup %4064  ;;  %3928 = vmatprep.subr.bf16.mxu1 %v4848_v63 }
 0xe7a   :  { %2328 = vmatprep.mubr.f32.mxu1 %v4065_v53 }
 0xe7b   :  { %2329 = vmatmul.mubr.f32.gmra.mrb[62].mxu1 %v4063_v56 }
 0xe7c   :  { %3930 = vmatpush3.bf16.msra.mxu1 %v4852_v50  ;;  %2398 = vmatprep.mubr.f32.mxu1 %v4053_v47 }
 0xe7d   :  { %3932 = vmatprep.subr.bf16.mxu1 %v4858_v6 }
 0xe80   :  { %3934 = vmatpush3.bf16.msra.mxu1 %v4862_v10 }
 0xe81   :  { %3936 = vmatprep.subr.bf16.mxu1 %v4868_v16 }
 0xe84   :  { %3938 = vmatpush3.bf16.msra.mxu1 %v4872_v18 }
 0xe85   :  { %3940 = vmatprep.subr.bf16.mxu1 %v4878_v27 }
 0xe88   :  { %3942 = vmatpush3.bf16.msra.mxu1 %v4882_v32 }
 0xe89   :  { %3944 = vmatprep.subr.bf16.mxu1 %v4888_v38 }
 0xe8c   :  { %3946 = vmatpush3.bf16.msra.mxu1 %v4892_v39 }
 0xe8f   :  { %2399 = vmatmul.mubr.f32.vlgmr.msra.gmra.mrb[64].mxu1 %v4051_v11 }
 0xe90   :  { %2403 = vmatprep.mubr.f32.mxu1 %v4057_v26 }
 0xe93   :  { %2404 = vmatmul.mubr.f32.gmra.mrb[66].mxu1 %v4055_v57 }
 0xe94   :  { %2408 = vmatprep.mubr.f32.mxu1 %v4061_v30 }
 0xe97   :  { %2409 = vmatmul.mubr.f32.gmra.mrb[68].mxu1 %v4059_v25 }
 0xe98   :  { %2413 = vmatprep.mubr.f32.mxu1 %v4065_v53 }
 0xe9b   :  { %2414 = vmatmul.mubr.f32.gmra.mrb[70].mxu1 %v4063_v56 }
 0xf42   :  { %v3377_v28 = vpop.f32.mrb[56].mxu1 }
 0xf43   :  { %v3378_v21 = vpop.f32.mrb[57].mxu1 }
 0xf44   :  { %v3379_v63 = vadd.f32 %v3378_v21, %v3377_v28 }
 0xf46   :  { %v3380_v50 = vpop.f32.mrb[58].mxu1 }
 0xf47   :  { %v3381_v6 = vpop.f32.mrb[59].mxu1 }
 0xf48   :  { %v3382_v10 = vadd.f32 %v3381_v6, %v3380_v50 }
 0xf4a   :  { %v3383_v16 = vpop.f32.mrb[60].mxu1 }
 0xf4b   :  { %v3384_v18 = vpop.f32.mrb[61].mxu1 }
 0xf4c   :  { %v3385_v27 = vadd.f32 %v3384_v18, %v3383_v16 }
 0xf4e   :  { %v3386_v32 = vpop.f32.mrb[62].mxu1 }
 0xf4f   :  { %v3387_v38 = vpop.f32.mrb[63].mxu1 }
 0xf50   :  { %v3388_v39 = vadd.f32 %v3387_v38, %v3386_v32 }
 0xf62   :  { %v3421_v45 = vpop.f32.mrb[64].mxu1 }
 0xf63   :  { %v3422_v49 = vpop.f32.mrb[65].mxu1 }
 0xf64   :  { %v3423_v17 = vadd.f32 %v3422_v49, %v3421_v45  ;;  %v3065_v45 = vld [vmem:[%s5629_s4 + $0x28] sm:$0xff] }
 0xf66   :  { %4066 = vrcp.f32 %v3423_v17  ;;  %v3424_v61 = vpop.f32.mrb[66].mxu1  ;;  %v3066_v17 = vld [vmem:[%s5629_s4 + $0x30] sm:$0xff] }
 0xf67   :  { %v3425_v1 = vpop.f32.mrb[67].mxu1 }
 0xf68   :  { %v3426_v40 = vadd.f32 %v3425_v1, %v3424_v61  ;;  %v3067_v61 = vld [vmem:[%s5629_s4 + $0x38] sm:$0xff] }
 0xf69   :  { %v3959_v1 = vpack.c.bf16 %v3067_v61, %v3066_v17 }
 0xf6a   :  { %4068 = vrcp.f32 %v3426_v40  ;;  %v3427_v54 = vpop.f32.mrb[68].mxu1  ;;  %v3068_v40 = vld [vmem:[%s5630_s5 + $0x40] sm:$0xff] }
 0xf6b   :  { %v3428_v7 = vpop.f32.mrb[69].mxu1 }
 0xf6c   :  { %v3429_v2 = vadd.f32 %v3428_v7, %v3427_v54  ;;  %v3069_v54 = vld [vmem:[%s5630_s5 + $0x48] sm:$0xff]  ;;  %v3070_v7 = vld [vmem:[%s5630_s5 + $0x50] sm:$0xff] }
 0xf6e   :  { %4070 = vrcp.f32 %v3429_v2  ;;  %v3430_v4 = vpop.f32.mrb[70].mxu1  ;;  %v3963_v2 = vpack.c.bf16 %v3069_v54, %v3068_v40 }
 0xf6f   :  { %v3431_v52 = vpop.f32.mrb[71].mxu1 }
 0xf70   :  { %v4067_v46 = vpop.eup %4066  ;;  %v3432_v12 = vadd.f32 %v3431_v52, %v3430_v4  ;;  %v3071_v4 = vld [vmem:[%s5630_s5 + $0x58] sm:$0xff]  ;;  %3964 = vmatprep.subr.bf16.mxu0 %v3963_v2 }
 0xf71   :  { %v2420_v23 = vmul.f32 %v4067_v46, %v3379_v63  ;;  %v3967_v52 = vpack.c.bf16 %v3071_v4, %v3070_v7  ;;  %v3072_v46 = vld [vmem:[%s5630_s5 + $0x60] sm:$0xff] }
 0xf72   :  { %4072 = vrcp.f32 %v3432_v12  ;;  %v3073_v12 = vld [vmem:[%s5630_s5 + $0x68] sm:$0xff] }
 0xf73   :  { %3667 = vmatprep.mubr.msk.f32.mxu0 %vm171_vm0, %v2420_v23  ;;  %v3971_v23 = vpack.c.bf16 %v3073_v12, %v3072_v46 }
 0xf74   :  { %v4069_v14 = vpop.eup %4068 }
 0xf75   :  { %v2422_v31 = vmul.f32 %v4069_v14, %v3382_v10 }
 0xf77   :  { %3668 = vmatmul.mubr.msk.f32.vlgmr.msra.gmra.mrb[76].mxu0 %vm171_vm0, %v2422_v31 }
 0xf78   :  { %v4071_v0 = vpop.eup %4070  ;;  %3966 = vmatpush3.bf16.msra.mxu0 %v3963_v2 }
 0xf79   :  { %v2424_v41 = vmul.f32 %v4071_v0, %v3385_v27  ;;  %3968 = vmatprep.subr.bf16.mxu0 %v3967_v52 }
 0xf7b   :  { %3670 = vmatprep.mubr.msk.f32.mxu0 %vm171_vm0, %v2424_v41 }
 0xf7c   :  { %v4073_v55 = vpop.eup %4072  ;;  %3970 = vmatpush3.bf16.msra.mxu0 %v3967_v52 }
 0xf7d   :  { %v2426_v33 = vmul.f32 %v4073_v55, %v3388_v39  ;;  %v3064_v39 = vld [vmem:[%s5629_s4 + $0x20] sm:$0xff]  ;;  %3972 = vmatprep.subr.bf16.mxu0 %v3971_v23 }
 0xf7e   :  { %v3955_v49 = vpack.c.bf16 %v3065_v45, %v3064_v39  ;;  %v2710_v45 = vrot.slane %v5481_v22, %v1385_v15 }
 0xf7f   :  { %3671 = vmatmul.mubr.msk.f32.gmra.mrb[78].mxu0 %vm171_vm0, %v2426_v33 }
 0xf80   :  { %3956 = vmatprep.subr.bf16.mxu1 %v3955_v49  ;;  %3974 = vmatpush3.bf16.msra.mxu0 %v3971_v23 }
 0xf81   :  { %3958 = vmatpush3.bf16.msra.mxu1 %v3955_v49 }
 0xf82   :  { %3960 = vmatprep.subr.bf16.mxu1 %v3959_v1 }
 0xf85   :  { %3962 = vmatpush3.bf16.msra.mxu1 %v3959_v1 }
0x104a   :  { %v3669_v43 = vpop.f32.mrb[76].mxu0 }
0x104b   :  { %v2515_v60 = vadd.f32 %v3669_v43, %v2430_v36  ;;  %v2509_v3 = vpop.f32.mrb[77].mxu0 }
0x104c   :  { %v2510_v13 = vadd.f32 %v2509_v3, %v2430_v36 }
0x104d   :  { %v2529_v51 = vadd.f32 %v2515_v60, %v5041_v34 }
0x104e   :  { %v2528_v19 = vadd.f32 %v2510_v13, %v5039_v35 }
0x104f   :  { %v2535_v9 = vsel %vm171_vm0, %v2529_v51, 0.0 }
0x1050   :  { %2536 = vadd.xlane.f32.xlu1 %v2535_v9  ;;  %v2532_v5 = vsel %vm171_vm0, %v2528_v19, 0.0 }
0x1052   :  { %v3672_v11 = vpop.f32.mrb[78].mxu0 }
0x1053   :  { %v2519_v59 = vpop.f32.mrb[79].mxu0  ;;  %v2525_v47 = vadd.f32 %v3672_v11, %v2430_v36 }
0x1054   :  { %v2520_v57 = vadd.f32 %v2519_v59, %v2430_v36  ;;  %2533 = vadd.xlane.f32.xlu1 %v2532_v5 }
0x1055   :  { %v2531_v25 = vadd.f32 %v2525_v47, %v5052_v8 }
0x1056   :  { %v2530_v48 = vadd.f32 %v2520_v57, %v5049_v62  ;;  %v2595_v57 = vrot.slane %v5481_v22, %v1270_v24  ;;  %v3074_v24 = vld [vmem:[%s5630_s5 + $0x70] sm:$0xff] }
0x1057   :  { %v2541_v34 = vsel %vm171_vm0, %v2531_v25, 0.0 }
0x1058   :  { %v2538_v26 = vsel %vm171_vm0, %v2530_v48, 0.0 }
0x1059   :  { %2539 = vadd.xlane.f32.xlu1 %v2538_v26 }
0x105d   :  { %2542 = vadd.xlane.f32.xlu1 %v2541_v34 }
0x10dd   :  { %v2537_v30 = vpop.xlane.xlu1 %2536 }
0x10de   :  { %v2545_v35 = vmul.f32 0.03125, %v2537_v30 }
0x10e0   :  { %v5494_v56 = vsub.f32 %v2529_v51, %v2545_v35 }
0x10e1   :  { %v2534_v53 = vpop.xlane.xlu1 %2533 }
0x10e2   :  { %v2544_v58 = vmul.f32 0.03125, %v2534_v53  ;;  %v2553_v37 = vmul.f32 %v5494_v56, %v5494_v56 }
0x10e4   :  { %v5498_v44 = vsub.f32 %v2528_v19, %v2544_v58  ;;  %v2559_v62 = vsel %vm171_vm0, %v2553_v37, 0.0  ;;  %v2587_v19 = vrot.slane %v5481_v22, %v1262_v20 }
0x10e5   :  { %2560 = vadd.xlane.f32.xlu1 %v2559_v62 }
0x10e6   :  { %v2540_v28 = vpop.xlane.xlu1 %2539  ;;  %v2552_v8 = vmul.f32 %v5498_v44, %v5498_v44 }
0x10e7   :  { %v2546_v21 = vmul.f32 0.03125, %v2540_v28  ;;  %v3127_v28 = vld [vmem:[%s5631_s7 + $0x1] ss:$0 sm:$0xff] }
0x10e8   :  { %v2556_v63 = vsel %vm171_vm0, %v2552_v8, 0.0 }
0x10e9   :  { %v5504_v50 = vsub.f32 %v2530_v48, %v2546_v21  ;;  %2557 = vadd.xlane.f32.xlu1 %v2556_v63 }
0x10ea   :  { %v2543_v6 = vpop.xlane.xlu1 %2542 }
0x10eb   :  { %v2547_v10 = vmul.f32 0.03125, %v2543_v6  ;;  %v2554_v16 = vmul.f32 %v5504_v50, %v5504_v50 }
0x10ed   :  { %v5508_v18 = vsub.f32 %v2531_v25, %v2547_v10  ;;  %v2562_v27 = vsel %vm171_vm0, %v2554_v16, 0.0 }
0x10ee   :  { %2563 = vadd.xlane.f32.xlu1 %v2562_v27 }
0x10ef   :  { %v2555_v32 = vmul.f32 %v5508_v18, %v5508_v18 }
0x10f1   :  { %v2565_v38 = vsel %vm171_vm0, %v2555_v32, 0.0 }
0x10f2   :  { %2566 = vadd.xlane.f32.xlu1 %v2565_v38 }
0x1172   :  { %v2561_v14 = vpop.xlane.xlu1 %2560 }
0x1173   :  { %v2569_v31 = vmul.f32 0.03125, %v2561_v14 }
0x1175   :  { %v2573_v0 = vadd.f32 1e-05, %v2569_v31 }
0x1176   :  { %v2558_v41 = vpop.xlane.xlu1 %2557 }
0x1177   :  { %4074 = vrsqrt.f32 %v2573_v0  ;;  %v2568_v55 = vmul.f32 0.03125, %v2558_v41 }
0x1179   :  { %v2572_v33 = vadd.f32 1e-05, %v2568_v55 }
0x117b   :  { %4076 = vrsqrt.f32 %v2572_v33  ;;  %v2564_v36 = vpop.xlane.xlu1 %2563 }
0x117c   :  { %v2570_v43 = vmul.f32 0.03125, %v2564_v36 }
0x117e   :  { %v2574_v60 = vadd.f32 1e-05, %v2570_v43 }
0x117f   :  { %v2567_v3 = vpop.xlane.xlu1 %2566 }
0x1180   :  { %4078 = vrsqrt.f32 %v2574_v60  ;;  %v2571_v13 = vmul.f32 0.03125, %v2567_v3 }
0x1181   :  { %v4075_v51 = vpop.eup %4074 }
0x1182   :  { %v2575_v9 = vadd.f32 1e-05, %v2571_v13  ;;  %v2581_v11 = vmul.f32 %v4075_v51, %v5494_v56 }
0x1184   :  { %4080 = vrsqrt.f32 %v2575_v9  ;;  %v2589_v47 = vmul.f32 %v2587_v19, %v2581_v11 }
0x1185   :  { %v4077_v59 = vpop.eup %4076 }
0x1186   :  { %v2580_v5 = vmul.f32 %v4077_v59, %v5498_v44  ;;  %v2597_v34 = vadd.f32 %v2595_v57, %v2589_v47  ;;  %v3075_v44 = vld [vmem:[%s5630_s5 + $0x78] sm:$0xff] }
0x1187   :  { %v3975_v62 = vpack.c.bf16 %v3075_v44, %v3074_v24 }
0x1188   :  { %v2588_v48 = vmul.f32 %v2587_v19, %v2580_v5 }
0x1189   :  { %3976 = vmatprep.subr.bf16.mxu0 %v3975_v62 }
0x118a   :  { %v4079_v26 = vpop.eup %4078  ;;  %v2596_v25 = vadd.f32 %v2595_v57, %v2588_v48  ;;  %3978 = vmatpush3.bf16.msra.mxu0 %v3975_v62 }
0x118b   :  { %v2582_v30 = vmul.f32 %v4079_v26, %v5504_v50 }
0x118c   :  { %3681 = vmatprep.mubr.msk.f32.mxu1 %vm171_vm0, %v2596_v25 }
0x118d   :  { %3682 = vmatmul.mubr.msk.f32.vlgmr.msra.gmra.mrb[72].mxu1 %vm171_vm0, %v2597_v34  ;;  %v2590_v20 = vmul.f32 %v2587_v19, %v2582_v30  ;;  %v2881_v30 = vld [vmem:[%s5632_s8 + $0x8] sm:$0xff] }
0x118e   :  { %v4081_v35 = vpop.eup %4080 }
0x118f   :  { %v2598_v56 = vadd.f32 %v2595_v57, %v2590_v20  ;;  %v2583_v53 = vmul.f32 %v4081_v35, %v5508_v18  ;;  %v2882_v35 = vld [vmem:[%s5632_s8 + $0x10] sm:$0xff] }
0x1191   :  { %3684 = vmatprep.mubr.msk.f32.mxu1 %vm171_vm0, %v2598_v56  ;;  %v2591_v58 = vmul.f32 %v2587_v19, %v2583_v53 }
0x1193   :  { %v2599_v37 = vadd.f32 %v2595_v57, %v2591_v58 }
0x1195   :  { %3685 = vmatmul.mubr.msk.f32.gmra.mrb[74].mxu1 %vm171_vm0, %v2599_v37 }
0x1260   :  { %v3683_v8 = vpop.f32.mrb[72].mxu1 }
0x1261   :  { %v2690_v21 = vadd.f32 %v3683_v8, %v3127_v28  ;;  %v2684_v63 = vpop.f32.mrb[73].mxu1 }
0x1262   :  { %v2685_v50 = vadd.f32 %v3127_v28, %v2684_v63 }
0x1263   :  { %v2704_v10 = vmax.f32 %v2690_v21, 0.0 }
0x1264   :  { %v2703_v6 = vmax.f32 %v2685_v50, 0.0 }
0x1266   :  { %3703 = vmatprep.mubr.msk.f32.mxu0 %vm1387_vm1, %v2703_v6 }
0x1267   :  { %3704 = vmatmul.mubr.msk.f32.vlgmr.msra.gmra.mrb[80].mxu0 %vm1387_vm1, %v2704_v10 }
0x1268   :  { %v3686_v16 = vpop.f32.mrb[74].mxu1 }
0x1269   :  { %v2700_v18 = vadd.f32 %v3686_v16, %v3127_v28  ;;  %v2694_v27 = vpop.f32.mrb[75].mxu1  ;;  %v2867_v16 = vrot.slane %v5481_v22, %v1543_v42 }
0x126a   :  { %v2695_v32 = vadd.f32 %v3127_v28, %v2694_v27 }
0x126b   :  { %v2706_v39 = vmax.f32 %v2700_v18, 0.0 }
0x126c   :  { %v2705_v38 = vmax.f32 %v2695_v32, 0.0 }
0x126e   :  { %3706 = vmatprep.mubr.msk.f32.mxu0 %vm1387_vm1, %v2705_v38 }
0x126f   :  { %3707 = vmatmul.mubr.msk.f32.gmra.mrb[82].mxu0 %vm1387_vm1, %v2706_v39  ;;  %v5636_v39 = vsub.s32 5, %v4907_v29  ;;  %v3136_v29 = vld [vmem:[%s5633_s9] ss:$0 sm:$0xff] }
0x133a   :  { %v3705_v49 = vpop.f32.mrb[80].mxu0 }
0x133b   :  { %v2795_v17 = vadd.f32 %v3705_v49, %v2710_v45  ;;  %v2789_v61 = vpop.f32.mrb[81].mxu0 }
0x133c   :  { %v2790_v1 = vadd.f32 %v2789_v61, %v2710_v45 }
0x133d   :  { %v2809_v40 = vadd.f32 %v2795_v17, %v2597_v34  ;;  %v2880_v34 = vld [vmem:[%s5632_s8] sm:$0xff] }
0x133e   :  { %v2808_v54 = vadd.f32 %v2790_v1, %v2596_v25  ;;  %v3979_v20 = vpack.c.bf16 %v2881_v30, %v2880_v34 }
0x133f   :  { %v2815_v7 = vsel %vm171_vm0, %v2809_v40, 0.0 }
0x1340   :  { %2816 = vadd.xlane.f32.xlu0 %v2815_v7  ;;  %v2812_v2 = vsel %vm171_vm0, %v2808_v54, 0.0  ;;  %3980 = vmatprep.subr.bf16.mxu1 %v3979_v20 }
0x1341   :  { %2813 = vadd.xlane.f32.xlu1 %v2812_v2  ;;  %3982 = vmatpush3.bf16.msra.mxu1 %v3979_v20 }
0x1342   :  { %v3708_v4 = vpop.f32.mrb[82].mxu0 }
0x1343   :  { %v2805_v52 = vadd.f32 %v3708_v4, %v2710_v45  ;;  %v2799_v46 = vpop.f32.mrb[83].mxu0 }
0x1344   :  { %v2800_v12 = vadd.f32 %v2799_v46, %v2710_v45  ;;  %v2875_v45 = vrot.slane %v5481_v22, %v5636_v39 }
0x1345   :  { %v2811_v23 = vadd.f32 %v2805_v52, %v2599_v37 }
0x1346   :  { %v2810_v14 = vadd.f32 %v2800_v12, %v2598_v56  ;;  %v2883_v56 = vld [vmem:[%s5632_s8 + $0x18] sm:$0xff] }
0x1347   :  { %v2821_v15 = vsel %vm171_vm0, %v2811_v23, 0.0  ;;  %v3983_v53 = vpack.c.bf16 %v2883_v56, %v2882_v35 }
0x1348   :  { %2822 = vadd.xlane.f32.xlu0 %v2821_v15  ;;  %v2818_v31 = vsel %vm171_vm0, %v2810_v14, 0.0 }
0x1349   :  { %2819 = vadd.xlane.f32.xlu1 %v2818_v31  ;;  %3984 = vmatprep.subr.bf16.mxu1 %v3983_v53 }
0x134a   :  { %3986 = vmatpush3.bf16.msra.mxu1 %v3983_v53 }
0x13cd   :  { %v2817_v0 = vpop.xlane.xlu0 %2816 }
0x13ce   :  { %v2825_v41 = vmul.f32 0.03125, %v2817_v0  ;;  %v2814_v55 = vpop.xlane.xlu1 %2813 }
0x13cf   :  { %v2824_v33 = vmul.f32 0.03125, %v2814_v55 }
0x13d0   :  { %v2829_v36 = vsub.f32 %v2809_v40, %v2825_v41 }
0x13d1   :  { %v2828_v43 = vsub.f32 %v2808_v54, %v2824_v33 }
0x13d2   :  { %v2833_v60 = vmul.f32 %v2829_v36, %v2829_v36 }
0x13d3   :  { %v2832_v3 = vmul.f32 %v2828_v43, %v2828_v43 }
0x13d4   :  { %v2839_v13 = vsel %vm171_vm0, %v2833_v60, 0.0 }
0x13d5   :  { %2840 = vadd.xlane.f32.xlu0 %v2839_v13  ;;  %v2823_v51 = vpop.xlane.xlu0 %2822  ;;  %v2836_v9 = vsel %vm171_vm0, %v2832_v3, 0.0 }
0x13d6   :  { %v2827_v19 = vmul.f32 0.03125, %v2823_v51  ;;  %2837 = vadd.xlane.f32.xlu1 %v2836_v9  ;;  %v2820_v11 = vpop.xlane.xlu1 %2819 }
0x13d7   :  { %v2826_v59 = vmul.f32 0.03125, %v2820_v11 }
0x13d8   :  { %v2831_v5 = vsub.f32 %v2811_v23, %v2827_v19 }
0x13d9   :  { %v2830_v47 = vsub.f32 %v2810_v14, %v2826_v59 }
0x13da   :  { %v2835_v57 = vmul.f32 %v2831_v5, %v2831_v5 }
0x13db   :  { %v2834_v48 = vmul.f32 %v2830_v47, %v2830_v47 }
0x13dc   :  { %v2845_v26 = vsel %vm171_vm0, %v2835_v57, 0.0 }
0x13dd   :  { %2846 = vadd.xlane.f32.xlu0 %v2845_v26  ;;  %v2842_v25 = vsel %vm171_vm0, %v2834_v48, 0.0 }
0x13de   :  { %2843 = vadd.xlane.f32.xlu1 %v2842_v25 }
0x1462   :  { %v2841_v58 = vpop.xlane.xlu0 %2840 }
0x1463   :  { %v2849_v37 = vmul.f32 0.03125, %v2841_v58  ;;  %v2838_v24 = vpop.xlane.xlu1 %2837 }
0x1464   :  { %v2848_v44 = vmul.f32 0.03125, %v2838_v24 }
0x1465   :  { %v2853_v62 = vadd.f32 1e-05, %v2849_v37 }
0x1466   :  { %v2852_v28 = vadd.f32 1e-05, %v2848_v44 }
0x1467   :  { %4082 = vrsqrt.f32 %v2853_v62 }
0x1468   :  { %4084 = vrsqrt.f32 %v2852_v28 }
0x146a   :  { %v2847_v8 = vpop.xlane.xlu0 %2846 }
0x146b   :  { %v2851_v21 = vmul.f32 0.03125, %v2847_v8  ;;  %v2844_v63 = vpop.xlane.xlu1 %2843 }
0x146c   :  { %v2850_v50 = vmul.f32 0.03125, %v2844_v63 }
0x146d   :  { %v2855_v6 = vadd.f32 1e-05, %v2851_v21 }
0x146e   :  { %v2854_v10 = vadd.f32 1e-05, %v2850_v50 }
0x146f   :  { %4086 = vrsqrt.f32 %v2855_v6 }
0x1470   :  { %4088 = vrsqrt.f32 %v2854_v10 }
0x1471   :  { %v4083_v18 = vpop.eup %4082 }
0x1472   :  { %v4085_v27 = vpop.eup %4084  ;;  %v2861_v32 = vmul.f32 %v4083_v18, %v2829_v36 }
0x1473   :  { %v2860_v38 = vmul.f32 %v4085_v27, %v2828_v43 }
0x1474   :  { %v2869_v49 = vmul.f32 %v2867_v16, %v2861_v32 }
0x1475   :  { %v2868_v17 = vmul.f32 %v2867_v16, %v2860_v38 }
0x1476   :  { %v2877_v1 = vadd.f32 %v2875_v45, %v2869_v49 }
0x1477   :  { %v2876_v61 = vadd.f32 %v2875_v45, %v2868_v17 }
0x1479   :  { %v4087_v40 = vpop.eup %4086  ;;  %3717 = vmatprep.mubr.msk.f32.mxu1 %vm171_vm0, %v2876_v61 }
0x147a   :  { %v4089_v54 = vpop.eup %4088  ;;  %3718 = vmatmul.mubr.msk.f32.vlgmr.msra.gmra.mrb[76].mxu1 %vm171_vm0, %v2877_v1  ;;  %v2863_v42 = vmul.f32 %v4087_v40, %v2831_v5 }
0x147b   :  { %v2862_v7 = vmul.f32 %v4089_v54, %v2830_v47 }
0x147c   :  { %v2871_v2 = vmul.f32 %v2867_v16, %v2863_v42 }
0x147d   :  { %v2870_v4 = vmul.f32 %v2867_v16, %v2862_v7 }
0x147e   :  { %v2879_v46 = vadd.f32 %v2875_v45, %v2871_v2 }
0x147f   :  { %v2878_v52 = vadd.f32 %v2875_v45, %v2870_v4 }
0x1481   :  { %3720 = vmatprep.mubr.msk.f32.mxu1 %vm171_vm0, %v2878_v52 }
0x1482   :  { %3721 = vmatmul.mubr.msk.f32.gmra.mrb[78].mxu1 %vm171_vm0, %v2879_v46 }
0x154d   :  { %v3719_v22 = vpop.f32.mrb[76].mxu1 }
0x154e   :  { %v2975_v12 = vadd.f32 %v3719_v22, %v3136_v29  ;;  %v2969_v23 = vpop.f32.mrb[77].mxu1 }
0x154f   :  { %v2970_v14 = vadd.f32 %v3136_v29, %v2969_v23 }
0x1550   :  { %2990 = vst.msk [vmem:[%s5634_s15 + $0x8] sm:$0xff] %vm2988_vm2, %v2975_v12 }
0x1551   :  { %2989 = vst.msk [vmem:[%s5634_s15] sm:$0xff] %vm2988_vm2, %v2970_v14 }
0x1555   :  { %v3722_v15 = vpop.f32.mrb[78].mxu1 }
0x1556   :  { %v2985_v31 = vadd.f32 %v3722_v15, %v3136_v29  ;;  %v2979_v0 = vpop.f32.mrb[79].mxu1 }
0x1557   :  { %v2980_v41 = vadd.f32 %v3136_v29, %v2979_v0 }
0x1558   :  { %2992 = vst.msk [vmem:[%s5634_s15 + $0x18] sm:$0xff] %vm2988_vm2, %v2985_v31 }
0x1559   :  { %2991 = vst.msk [vmem:[%s5634_s15 + $0x10] sm:$0xff] %vm2988_vm2, %v2980_v41 }

</bundles_post_ra>
